<compile_context>
chip_gen: v5e
topology: v5e:2x2
jax: 0.10.0
libtpu: 0.0.40
codegen_flags: <defaults>
</compile_context>

<pallas_src>
import math

import jax
import jax.numpy as jnp
from jax import lax
from jax.experimental import pallas as pl
from jax.experimental.pallas import tpu as pltpu

# --------------- tiny-BERT config (consistent with the module's forward) ---------------
B, S = 2, 8             # batch, sequence
H, NH = 32, 2           # hidden, num heads
DH = H // NH            # head dim
INTER = 64              # FFN intermediate
LAYERS = 2              # transformer layers
BASE_VOCAB = 48         # "pretrained" vocab
NUM_TFIDF = 4           # len(tf_idf_words) -> extra rows appended to the embedding
VOCAB = BASE_VOCAB + NUM_TFIDF
VOCAB_PAD = 56          # vocab rows rounded up to a sublane multiple (extra rows are zero)
MAX_POS = 16
NUM_LABELS = 4
LN_EPS = 1e-12
M = B * S

# ---- misc slab (f32, width H) row offsets: all 8-aligned ----
R_WORD = 0                      # VOCAB_PAD rows : word embeddings (padded)
R_POS = 56                      # MAX_POS rows   : position embeddings
R_TYPE = 72                     # 2 rows         : token-type embeddings
R_ELNG = 80                     # 1 row          : embedding LayerNorm gamma
R_ELNB = 88                     # 1 row          : embedding LayerNorm beta
R_POOLW = 96                    # H rows         : pooler dense weight
R_POOLB = 128                   # 1 row          : pooler dense bias
R_CLSW = 136                    # H rows         : classifier weight (cols 0..NUM_LABELS-1)
R_CLSB = 168                    # 1 row          : classifier bias
MISC_ROWS = 176

# ---- per-layer weight slab (bf16): each segment starts on a 128-lane boundary ----
C_QKV, C_AO, C_FI = 0, 128, 256
WH_COLS = 384

# ---- per-layer bias / LN slab (f32): 128-lane segments ----
B_QKV, B_AO, B_LN1G, B_LN1B = 0, 128, 256, 384
B_FI, B_FO, B_LN2G, B_LN2B = 512, 640, 768, 896
BIAS_COLS = 1024

OUT_R, OUT_C = 8, 128           # single lane-dense output slab

VMEM = pl.BlockSpec(memory_space=pltpu.MemorySpace.VMEM)


def _gelu(x):
    return 0.5 * x * (1.0 + lax.erf(x * jnp.float32(1.0 / math.sqrt(2.0))))


def _layer_norm(x, g, b):
    mean = jnp.mean(x, axis=-1, keepdims=True)
    var = jnp.mean(jnp.square(x - mean), axis=-1, keepdims=True)
    return (x - mean) * lax.rsqrt(var + jnp.float32(LN_EPS)) * g + b


# ------------------------- single fused forward-pass kernel ----------------------------
def _fused_dorne_kernel(tok_ref, misc_ref, wh_ref, wi_ref, bias_ref, out_ref):
    f32 = jnp.float32
    bf16 = jnp.bfloat16

    ids = tok_ref[:, 0:1]                                   # (M, 1) int32
    amask = tok_ref[:, 1:2].astype(f32)                     # (M, 1)
    lbl = tok_ref[0:B, 2:3]                                 # (B, 1) int32

    # ---- embeddings: one-hot MXU gather + (pos + type) add + LayerNorm, all in-kernel ----
    col = lax.broadcasted_iota(jnp.int32, (M, VOCAB_PAD), 1)
    onehot = (col == ids).astype(f32)                       # (M, VOCAB_PAD)
    h = jnp.dot(onehot, misc_ref[R_WORD:R_WORD + VOCAB_PAD, :], preferred_element_type=f32)
    pos_type = misc_ref[R_POS:R_POS + S, :] + misc_ref[R_TYPE:R_TYPE + 1, :]   # (S, H)
    h = (h.reshape(B, S, H) + pos_type[None, :, :]).reshape(M, H)
    h = _layer_norm(h, misc_ref[R_ELNG:R_ELNG + 1, :], misc_ref[R_ELNB:R_ELNB + 1, :])

    # extended additive attention mask, broadcast hoisted above all loops
    neg = ((1.0 - amask) * f32(-1e9)).reshape(B, S)         # (B, S)
    neg_b = neg[:, None, :]                                 # (B, 1, S)
    scale = f32(1.0 / math.sqrt(DH))

    for l in range(LAYERS):                                 # static unroll
        x = h
        x16 = x.astype(bf16)
        # fused Q|K|V projection: one (M,H)x(H,3H) bf16 MXU pass, f32 accumulation
        qkv = (jnp.dot(x16, wh_ref[l, :, C_QKV:C_QKV + 3 * H], preferred_element_type=f32)
               + bias_ref[l, :, B_QKV:B_QKV + 3 * H])
        q, k, v = qkv[:, :H], qkv[:, H:2 * H], qkv[:, 2 * H:3 * H]

        # multi-head attention: the output projection is distributed over heads
        # (linearity), so no lane-axis concatenate is ever materialised.
        attn = jnp.zeros((M, H), f32)
        for hd in range(NH):
            lo = hd * DH
            qh = (q[:, lo:lo + DH] * scale).reshape(B, S, DH)   # 1/sqrt(DH) folded into q
            kh = k[:, lo:lo + DH].reshape(B, S, DH)
            vh = v[:, lo:lo + DH].reshape(B, S, DH)
            s = jnp.einsum("bqd,bkd->bqk", qh, kh, preferred_element_type=f32) + neg_b
            s = s - jnp.max(s, axis=-1, keepdims=True)
            p = jnp.exp(s)
            p = p * pl.reciprocal(jnp.sum(p, axis=-1, keepdims=True), approx=True)
            ch = jnp.einsum("bqk,bkd->bqd", p, vh, preferred_element_type=f32).reshape(M, DH)
            attn = attn + jnp.dot(ch.astype(bf16),
                                  wh_ref[l, lo:lo + DH, C_AO:C_AO + H],
                                  preferred_element_type=f32)
        attn = attn + bias_ref[l, :, B_AO:B_AO + H]
        h = _layer_norm(x + attn,
                        bias_ref[l, :, B_LN1G:B_LN1G + H],
                        bias_ref[l, :, B_LN1B:B_LN1B + H])

        # FFN (gelu) + residual + LN
        inter = _gelu(jnp.dot(h.astype(bf16), wh_ref[l, :, C_FI:C_FI + INTER],
                              preferred_element_type=f32)
                      + bias_ref[l, :, B_FI:B_FI + INTER])
        ffn = (jnp.dot(inter.astype(bf16), wi_ref[l], preferred_element_type=f32)
               + bias_ref[l, :, B_FO:B_FO + H])
        h = _layer_norm(h + ffn,
                        bias_ref[l, :, B_LN2G:B_LN2G + H],
                        bias_ref[l, :, B_LN2B:B_LN2B + H])

    # ---- BertPooler: CLS row of each sequence (strided slice) -> dense -> tanh ----
    cls = h.reshape(B, S, H)[:, 0:1, :].reshape(B, H)
    pooled = jnp.tanh(jnp.dot(cls, misc_ref[R_POOLW:R_POOLW + H, :],
                              preferred_element_type=f32)
                      + misc_ref[R_POOLB:R_POOLB + 1, :])

    # ---- classifier head (dropout omitted: eval mode); cls_w zero-padded to H lanes ----
    logits_full = (jnp.dot(pooled, misc_ref[R_CLSW:R_CLSW + H, :], preferred_element_type=f32)
                   + misc_ref[R_CLSB:R_CLSB + 1, :])
    logits = logits_full[:, 0:NUM_LABELS]                   # (B, NUM_LABELS)

    # ---- CrossEntropyLoss (mean, ignore_index=-100) ----
    mx = jnp.max(logits, axis=-1, keepdims=True)
    lse = jnp.log(jnp.sum(jnp.exp(logits - mx), axis=-1, keepdims=True)) + mx
    lcol = lax.broadcasted_iota(jnp.int32, (B, NUM_LABELS), 1)
    picked = jnp.sum(jnp.where(lcol == lbl, logits, 0.0), axis=-1, keepdims=True)
    valid = (lbl != -100).astype(f32)
    nll = (lse - picked) * valid                            # (B, 1)
    loss11 = (jnp.sum(nll, axis=0, keepdims=True)
              / jnp.sum(valid, axis=0, keepdims=True))      # (1, 1)

    # ---- single lane-dense output slab: one writeback DMA carries logits + loss ----
    out_ref[...] = jnp.zeros((OUT_R, OUT_C), f32)
    out_ref[0:B, 0:NUM_LABELS] = logits
    out_ref[B:B + 1, 0:1] = loss11


# ------------------------------- parameters (deterministic) -----------------------------
def init_params(key):
    keys = iter(jax.random.split(key, 32))

    def nrm(shape, std=0.02):
        return std * jax.random.normal(next(keys), shape, jnp.float32)

    # embeddings: "pretrained" rows + tf-idf rows appended (EmbeddingEnhancedModel resize)
    old_word = nrm((BASE_VOCAB, H))
    new_word = jax.random.normal(next(keys), (NUM_TFIDF, H), jnp.float32)   # nn.init.normal_
    word_emb = jnp.concatenate([old_word, new_word], axis=0)                # (VOCAB, H)
    pos_emb = nrm((MAX_POS, H))
    type_emb = nrm((2, H))
    pool_w = nrm((H, H))
    cls_w = nrm((H, NUM_LABELS))

    misc = jnp.zeros((MISC_ROWS, H), jnp.float32)
    misc = misc.at[R_WORD:R_WORD + VOCAB].set(word_emb)
    misc = misc.at[R_POS:R_POS + MAX_POS].set(pos_emb)
    misc = misc.at[R_TYPE:R_TYPE + 2].set(type_emb)
    misc = misc.at[R_ELNG].set(jnp.ones((H,), jnp.float32))        # emb-LN gamma (beta = 0)
    misc = misc.at[R_POOLW:R_POOLW + H].set(pool_w)                # pooler bias = 0
    misc = misc.at[R_CLSW:R_CLSW + H, :NUM_LABELS].set(cls_w)      # classifier bias = 0

    # per-layer weights stacked (LAYERS, ...) and packed into lane-aligned segments
    qkv_w = nrm((LAYERS, H, 3 * H))
    ao_w = nrm((LAYERS, H, H))
    fi_w = nrm((LAYERS, H, INTER))
    fo_w = nrm((LAYERS, INTER, H))

    wh = jnp.zeros((LAYERS, H, WH_COLS), jnp.float32)
    wh = wh.at[:, :, C_QKV:C_QKV + 3 * H].set(qkv_w)
    wh = wh.at[:, :, C_AO:C_AO + H].set(ao_w)
    wh = wh.at[:, :, C_FI:C_FI + INTER].set(fi_w)

    bias = jnp.zeros((LAYERS, 1, BIAS_COLS), jnp.float32)          # Linear biases / LN betas = 0
    bias = bias.at[:, :, B_LN1G:B_LN1G + H].set(1.0)               # LN gammas = 1
    bias = bias.at[:, :, B_LN2G:B_LN2G + H].set(1.0)

    return {
        "misc": misc,                                  # f32: embeddings + LN + pooler + cls
        "wh": wh.astype(jnp.bfloat16),                 # bf16 MXU operands
        "wi": fo_w.astype(jnp.bfloat16),               # bf16 MXU operands
        "bias": bias,                                  # f32 biases / LN params
    }


# ------------------------------------ forward -------------------------------------------
def dorne_forward(params, input_ids, attention_mask, labels=None):
    # pack ids | attention_mask | labels into one int32 slab (one input DMA)
    ids_col = input_ids.reshape(M, 1).astype(jnp.int32)
    mask_col = attention_mask.reshape(M, 1).astype(jnp.int32)
    lbl_col = jnp.zeros((M, 1), jnp.int32)
    if labels is not None:
        lbl_col = lbl_col.at[:B, 0].set(labels.astype(jnp.int32).reshape(B))
    tok = jnp.concatenate([ids_col, mask_col, lbl_col], axis=1)    # (M, 3) int32

    out = pl.pallas_call(
        _fused_dorne_kernel,
        out_shape=jax.ShapeDtypeStruct((OUT_R, OUT_C), jnp.float32),
        in_specs=[VMEM] * 5,
        out_specs=VMEM,
    )(tok, params["misc"], params["wh"], params["wi"], params["bias"])

    logits = out[:B, :NUM_LABELS]
    loss = out[B, 0] if labels is not None else None
    return loss, logits


# ------------------------------------- main ----------------------------------------------
if __name__ == "__main__":
    key = jax.random.PRNGKey(0)
    pkey, ikey, lkey = jax.random.split(key, 3)
    params = init_params(pkey)

    input_ids = jax.random.randint(ikey, (B, S), 0, VOCAB, dtype=jnp.int32)
    attention_mask = jnp.ones((B, S), jnp.int32).at[1, 6:].set(0)
    labels = jax.random.randint(lkey, (B,), 0, NUM_LABELS, dtype=jnp.int32)

    fwd = jax.jit(dorne_forward)
    loss, logits = fwd(params, input_ids, attention_mask, labels)
    jax.block_until_ready((loss, logits))

    assert logits.shape == (B, NUM_LABELS)
    assert loss.shape == ()
    print("KERNEL_OK")
</pallas_src>

<mosaic_0001>
module attributes {stable_mosaic.version = 11 : i64} {
  func.func @_fused_dorne_kernel(%arg0: memref<16x3xi32, #tpu.memory_space<vmem>>, %arg1: memref<176x32xf32, #tpu.memory_space<vmem>>, %arg2: memref<2x32x384xbf16, #tpu.memory_space<vmem>>, %arg3: memref<2x64x32xbf16, #tpu.memory_space<vmem>>, %arg4: memref<2x1x1024xf32, #tpu.memory_space<vmem>>, %arg5: memref<8x128xf32, #tpu.memory_space<vmem>>) attributes {dimension_semantics = [], scalar_prefetch = 0 : i64, scratch_operands = 0 : i64, tpu.core_type = #tpu.core_type<tc>} {
    %c0 = arith.constant 0 : index
    %c0_0 = arith.constant 0 : index
    %0 = vector.load %arg0[%c0, %c0_0] : memref<16x3xi32, #tpu.memory_space<vmem>>, vector<16x1xi32>
    %c0_1 = arith.constant 0 : index
    %c1 = arith.constant 1 : index
    %1 = vector.load %arg0[%c0_1, %c1] : memref<16x3xi32, #tpu.memory_space<vmem>>, vector<16x1xi32>
    %2 = arith.sitofp %1 : vector<16x1xi32> to vector<16x1xf32>
    %c0_2 = arith.constant 0 : index
    %c2 = arith.constant 2 : index
    %3 = vector.load %arg0[%c0_2, %c2] : memref<16x3xi32, #tpu.memory_space<vmem>>, vector<2x1xi32>
    %4 = tpu.iota {dimensions = array<i32: 1>} : vector<16x56xi32>
    %5 = vector.broadcast %0 : vector<16x1xi32> to vector<16x56xi32>
    %6 = arith.cmpi eq, %4, %5 : vector<16x56xi32>
    %7 = arith.extui %6 : vector<16x56xi1> to vector<16x56xi32>
    %8 = arith.sitofp %7 : vector<16x56xi32> to vector<16x56xf32>
    %c0_3 = arith.constant 0 : index
    %c0_4 = arith.constant 0 : index
    %9 = vector.load %arg1[%c0_3, %c0_4] : memref<176x32xf32, #tpu.memory_space<vmem>>, vector<56x32xf32>
    %cst = arith.constant dense<0.000000e+00> : vector<16x32xf32>
    %10 = tpu.matmul %8, %9, %cst {dimension_numbers = #tpu.dot_dimension_numbers<[1], [0], [0], [1], [0, 0, 1, 1], [], []>} : vector<16x56xf32>, vector<56x32xf32>, vector<16x32xf32> -> vector<16x32xf32>
    %c56 = arith.constant 56 : index
    %c0_5 = arith.constant 0 : index
    %11 = vector.load %arg1[%c56, %c0_5] : memref<176x32xf32, #tpu.memory_space<vmem>>, vector<8x32xf32>
    %c72 = arith.constant 72 : index
    %c0_6 = arith.constant 0 : index
    %12 = vector.load %arg1[%c72, %c0_6] : memref<176x32xf32, #tpu.memory_space<vmem>>, vector<1x32xf32>
    %13 = vector.broadcast %12 : vector<1x32xf32> to vector<8x32xf32>
    %14 = arith.addf %11, %13 : vector<8x32xf32>
    %15 = vector.shape_cast %10 : vector<16x32xf32> to vector<2x8x32xf32>
    %16 = vector.shape_cast %14 : vector<8x32xf32> to vector<1x8x32xf32>
    %17 = vector.broadcast %16 : vector<1x8x32xf32> to vector<2x8x32xf32>
    %18 = arith.addf %15, %17 : vector<2x8x32xf32>
    %19 = vector.shape_cast %18 : vector<2x8x32xf32> to vector<16x32xf32>
    %c80 = arith.constant 80 : index
    %c0_7 = arith.constant 0 : index
    %20 = vector.load %arg1[%c80, %c0_7] : memref<176x32xf32, #tpu.memory_space<vmem>>, vector<1x32xf32>
    %c88 = arith.constant 88 : index
    %c0_8 = arith.constant 0 : index
    %21 = vector.load %arg1[%c88, %c0_8] : memref<176x32xf32, #tpu.memory_space<vmem>>, vector<1x32xf32>
    %cst_9 = arith.constant dense<0.000000e+00> : vector<16xf32>
    %22 = vector.multi_reduction <add>, %19, %cst_9 [1] : vector<16x32xf32> to vector<16xf32>
    %23 = vector.shape_cast %22 : vector<16xf32> to vector<16x1xf32>
    %cst_10 = arith.constant 3.200000e+01 : f32
    %24 = vector.broadcast %cst_10 : f32 to vector<16x1xf32>
    %25 = arith.divf %23, %24 : vector<16x1xf32>
    %26 = vector.broadcast %25 : vector<16x1xf32> to vector<16x32xf32>
    %27 = arith.subf %19, %26 : vector<16x32xf32>
    %28 = arith.mulf %27, %27 : vector<16x32xf32>
    %cst_11 = arith.constant dense<0.000000e+00> : vector<16xf32>
    %29 = vector.multi_reduction <add>, %28, %cst_11 [1] : vector<16x32xf32> to vector<16xf32>
    %30 = vector.shape_cast %29 : vector<16xf32> to vector<16x1xf32>
    %cst_12 = arith.constant 3.200000e+01 : f32
    %31 = vector.broadcast %cst_12 : f32 to vector<16x1xf32>
    %32 = arith.divf %30, %31 : vector<16x1xf32>
    %33 = vector.broadcast %25 : vector<16x1xf32> to vector<16x32xf32>
    %34 = arith.subf %19, %33 : vector<16x32xf32>
    %cst_13 = arith.constant 9.99999996E-13 : f32
    %35 = vector.broadcast %cst_13 : f32 to vector<16x1xf32>
    %36 = arith.addf %32, %35 : vector<16x1xf32>
    %37 = math.rsqrt %36 : vector<16x1xf32>
    %38 = vector.broadcast %37 : vector<16x1xf32> to vector<16x32xf32>
    %39 = arith.mulf %34, %38 : vector<16x32xf32>
    %40 = vector.broadcast %20 : vector<1x32xf32> to vector<16x32xf32>
    %41 = arith.mulf %39, %40 : vector<16x32xf32>
    %42 = vector.broadcast %21 : vector<1x32xf32> to vector<16x32xf32>
    %43 = arith.addf %41, %42 : vector<16x32xf32>
    %cst_14 = arith.constant 1.000000e+00 : f32
    %44 = vector.broadcast %cst_14 : f32 to vector<16x1xf32>
    %45 = arith.subf %44, %2 : vector<16x1xf32>
    %cst_15 = arith.constant -1.000000e+09 : f32
    %46 = vector.broadcast %cst_15 : f32 to vector<16x1xf32>
    %47 = arith.mulf %45, %46 : vector<16x1xf32>
    %48 = vector.shape_cast %47 : vector<16x1xf32> to vector<2x8xf32>
    %49 = vector.shape_cast %48 : vector<2x8xf32> to vector<2x1x8xf32>
    %50 = arith.truncf %43 : vector<16x32xf32> to vector<16x32xbf16>
    %c0_16 = arith.constant 0 : index
    %c0_17 = arith.constant 0 : index
    %c0_18 = arith.constant 0 : index
    %51 = vector.load %arg2[%c0_16, %c0_17, %c0_18] : memref<2x32x384xbf16, #tpu.memory_space<vmem>>, vector<1x32x96xbf16>
    %52 = vector.shape_cast %51 : vector<1x32x96xbf16> to vector<32x96xbf16>
    %cst_19 = arith.constant dense<0.000000e+00> : vector<16x96xf32>
    %53 = tpu.matmul %50, %52, %cst_19 {dimension_numbers = #tpu.dot_dimension_numbers<[1], [0], [0], [1], [0, 0, 1, 1], [], []>} : vector<16x32xbf16>, vector<32x96xbf16>, vector<16x96xf32> -> vector<16x96xf32>
    %c0_20 = arith.constant 0 : index
    %c0_21 = arith.constant 0 : index
    %c0_22 = arith.constant 0 : index
    %54 = vector.load %arg4[%c0_20, %c0_21, %c0_22] : memref<2x1x1024xf32, #tpu.memory_space<vmem>>, vector<1x1x96xf32>
    %55 = vector.shape_cast %54 : vector<1x1x96xf32> to vector<1x96xf32>
    %56 = vector.broadcast %55 : vector<1x96xf32> to vector<16x96xf32>
    %57 = arith.addf %53, %56 : vector<16x96xf32>
    %58 = vector.extract_strided_slice %57 {offsets = [0, 0], sizes = [16, 32], strides = [1, 1]} : vector<16x96xf32> to vector<16x32xf32>
    %59 = vector.extract_strided_slice %57 {offsets = [0, 32], sizes = [16, 32], strides = [1, 1]} : vector<16x96xf32> to vector<16x32xf32>
    %60 = vector.extract_strided_slice %57 {offsets = [0, 64], sizes = [16, 32], strides = [1, 1]} : vector<16x96xf32> to vector<16x32xf32>
    %cst_23 = arith.constant 0.000000e+00 : f32
    %61 = vector.broadcast %cst_23 : f32 to vector<16x32xf32>
    %62 = vector.extract_strided_slice %58 {offsets = [0, 0], sizes = [16, 16], strides = [1, 1]} : vector<16x32xf32> to vector<16x16xf32>
    %cst_24 = arith.constant 2.500000e-01 : f32
    %63 = vector.broadcast %cst_24 : f32 to vector<16x16xf32>
    %64 = arith.mulf %62, %63 : vector<16x16xf32>
    %65 = vector.shape_cast %64 : vector<16x16xf32> to vector<2x8x16xf32>
    %66 = vector.extract_strided_slice %59 {offsets = [0, 0], sizes = [16, 16], strides = [1, 1]} : vector<16x32xf32> to vector<16x16xf32>
    %67 = vector.shape_cast %66 : vector<16x16xf32> to vector<2x8x16xf32>
    %68 = vector.extract_strided_slice %60 {offsets = [0, 0], sizes = [16, 16], strides = [1, 1]} : vector<16x32xf32> to vector<16x16xf32>
    %69 = vector.shape_cast %68 : vector<16x16xf32> to vector<2x8x16xf32>
    "tpu.trace_start"() <{level = 10 : i32, message = "bqd,bkd->bqk"}> : () -> ()
    %cst_25 = arith.constant dense<0.000000e+00> : vector<2x8x8xf32>
    %70 = tpu.matmul %65, %67, %cst_25 {dimension_numbers = #tpu.dot_dimension_numbers<[2], [2], [1], [1], [0, 0, 0, 1, 1, 1], [0], [0]>} : vector<2x8x16xf32>, vector<2x8x16xf32>, vector<2x8x8xf32> -> vector<2x8x8xf32>
    "tpu.trace_stop"() : () -> ()
    %71 = vector.broadcast %49 : vector<2x1x8xf32> to vector<2x8x8xf32>
    %72 = arith.addf %70, %71 : vector<2x8x8xf32>
    %cst_26 = arith.constant dense<0xFF800000> : vector<2x8xf32>
    %73 = vector.multi_reduction <maximumf>, %72, %cst_26 [2] : vector<2x8x8xf32> to vector<2x8xf32>
    %74 = vector.shape_cast %73 : vector<2x8xf32> to vector<2x8x1xf32>
    %75 = vector.broadcast %74 : vector<2x8x1xf32> to vector<2x8x8xf32>
    %76 = arith.subf %72, %75 : vector<2x8x8xf32>
    %77 = math.exp %76 : vector<2x8x8xf32>
    %cst_27 = arith.constant dense<0.000000e+00> : vector<2x8xf32>
    %78 = vector.multi_reduction <add>, %77, %cst_27 [2] : vector<2x8x8xf32> to vector<2x8xf32>
    %79 = vector.shape_cast %78 : vector<2x8xf32> to vector<2x8x1xf32>
    %80 = tpu.reciprocal %79 {approx = true} : vector<2x8x1xf32> -> vector<2x8x1xf32>
    %81 = vector.broadcast %80 : vector<2x8x1xf32> to vector<2x8x8xf32>
    %82 = arith.mulf %77, %81 : vector<2x8x8xf32>
    "tpu.trace_start"() <{level = 10 : i32, message = "bqk,bkd->bqd"}> : () -> ()
    %cst_28 = arith.constant dense<0.000000e+00> : vector<2x8x16xf32>
    %83 = tpu.matmul %82, %69, %cst_28 {dimension_numbers = #tpu.dot_dimension_numbers<[2], [1], [1], [2], [0, 0, 0, 1, 1, 2], [0], [0]>} : vector<2x8x8xf32>, vector<2x8x16xf32>, vector<2x8x16xf32> -> vector<2x8x16xf32>
    "tpu.trace_stop"() : () -> ()
    %84 = vector.shape_cast %83 : vector<2x8x16xf32> to vector<16x16xf32>
    %85 = arith.truncf %84 : vector<16x16xf32> to vector<16x16xbf16>
    %c0_29 = arith.constant 0 : index
    %c0_30 = arith.constant 0 : index
    %c128 = arith.constant 128 : index
    %86 = vector.load %arg2[%c0_29, %c0_30, %c128] : memref<2x32x384xbf16, #tpu.memory_space<vmem>>, vector<1x16x32xbf16>
    %87 = vector.shape_cast %86 : vector<1x16x32xbf16> to vector<16x32xbf16>
    %cst_31 = arith.constant dense<0.000000e+00> : vector<16x32xf32>
    %88 = tpu.matmul %85, %87, %cst_31 {dimension_numbers = #tpu.dot_dimension_numbers<[1], [0], [0], [1], [0, 0, 1, 1], [], []>} : vector<16x16xbf16>, vector<16x32xbf16>, vector<16x32xf32> -> vector<16x32xf32>
    %89 = arith.addf %61, %88 : vector<16x32xf32>
    %90 = vector.extract_strided_slice %58 {offsets = [0, 16], sizes = [16, 16], strides = [1, 1]} : vector<16x32xf32> to vector<16x16xf32>
    %cst_32 = arith.constant 2.500000e-01 : f32
    %91 = vector.broadcast %cst_32 : f32 to vector<16x16xf32>
    %92 = arith.mulf %90, %91 : vector<16x16xf32>
    %93 = vector.shape_cast %92 : vector<16x16xf32> to vector<2x8x16xf32>
    %94 = vector.extract_strided_slice %59 {offsets = [0, 16], sizes = [16, 16], strides = [1, 1]} : vector<16x32xf32> to vector<16x16xf32>
    %95 = vector.shape_cast %94 : vector<16x16xf32> to vector<2x8x16xf32>
    %96 = vector.extract_strided_slice %60 {offsets = [0, 16], sizes = [16, 16], strides = [1, 1]} : vector<16x32xf32> to vector<16x16xf32>
    %97 = vector.shape_cast %96 : vector<16x16xf32> to vector<2x8x16xf32>
    "tpu.trace_start"() <{level = 10 : i32, message = "bqd,bkd->bqk"}> : () -> ()
    %cst_33 = arith.constant dense<0.000000e+00> : vector<2x8x8xf32>
    %98 = tpu.matmul %93, %95, %cst_33 {dimension_numbers = #tpu.dot_dimension_numbers<[2], [2], [1], [1], [0, 0, 0, 1, 1, 1], [0], [0]>} : vector<2x8x16xf32>, vector<2x8x16xf32>, vector<2x8x8xf32> -> vector<2x8x8xf32>
    "tpu.trace_stop"() : () -> ()
    %99 = vector.broadcast %49 : vector<2x1x8xf32> to vector<2x8x8xf32>
    %100 = arith.addf %98, %99 : vector<2x8x8xf32>
    %cst_34 = arith.constant dense<0xFF800000> : vector<2x8xf32>
    %101 = vector.multi_reduction <maximumf>, %100, %cst_34 [2] : vector<2x8x8xf32> to vector<2x8xf32>
    %102 = vector.shape_cast %101 : vector<2x8xf32> to vector<2x8x1xf32>
    %103 = vector.broadcast %102 : vector<2x8x1xf32> to vector<2x8x8xf32>
    %104 = arith.subf %100, %103 : vector<2x8x8xf32>
    %105 = math.exp %104 : vector<2x8x8xf32>
    %cst_35 = arith.constant dense<0.000000e+00> : vector<2x8xf32>
    %106 = vector.multi_reduction <add>, %105, %cst_35 [2] : vector<2x8x8xf32> to vector<2x8xf32>
    %107 = vector.shape_cast %106 : vector<2x8xf32> to vector<2x8x1xf32>
    %108 = tpu.reciprocal %107 {approx = true} : vector<2x8x1xf32> -> vector<2x8x1xf32>
    %109 = vector.broadcast %108 : vector<2x8x1xf32> to vector<2x8x8xf32>
    %110 = arith.mulf %105, %109 : vector<2x8x8xf32>
    "tpu.trace_start"() <{level = 10 : i32, message = "bqk,bkd->bqd"}> : () -> ()
    %cst_36 = arith.constant dense<0.000000e+00> : vector<2x8x16xf32>
    %111 = tpu.matmul %110, %97, %cst_36 {dimension_numbers = #tpu.dot_dimension_numbers<[2], [1], [1], [2], [0, 0, 0, 1, 1, 2], [0], [0]>} : vector<2x8x8xf32>, vector<2x8x16xf32>, vector<2x8x16xf32> -> vector<2x8x16xf32>
    "tpu.trace_stop"() : () -> ()
    %112 = vector.shape_cast %111 : vector<2x8x16xf32> to vector<16x16xf32>
    %113 = arith.truncf %112 : vector<16x16xf32> to vector<16x16xbf16>
    %c0_37 = arith.constant 0 : index
    %c16 = arith.constant 16 : index
    %c128_38 = arith.constant 128 : index
    %114 = vector.load %arg2[%c0_37, %c16, %c128_38] : memref<2x32x384xbf16, #tpu.memory_space<vmem>>, vector<1x16x32xbf16>
    %115 = vector.shape_cast %114 : vector<1x16x32xbf16> to vector<16x32xbf16>
    %cst_39 = arith.constant dense<0.000000e+00> : vector<16x32xf32>
    %116 = tpu.matmul %113, %115, %cst_39 {dimension_numbers = #tpu.dot_dimension_numbers<[1], [0], [0], [1], [0, 0, 1, 1], [], []>} : vector<16x16xbf16>, vector<16x32xbf16>, vector<16x32xf32> -> vector<16x32xf32>
    %117 = arith.addf %89, %116 : vector<16x32xf32>
    %c0_40 = arith.constant 0 : index
    %c0_41 = arith.constant 0 : index
    %c128_42 = arith.constant 128 : index
    %118 = vector.load %arg4[%c0_40, %c0_41, %c128_42] : memref<2x1x1024xf32, #tpu.memory_space<vmem>>, vector<1x1x32xf32>
    %119 = vector.shape_cast %118 : vector<1x1x32xf32> to vector<1x32xf32>
    %120 = vector.broadcast %119 : vector<1x32xf32> to vector<16x32xf32>
    %121 = arith.addf %117, %120 : vector<16x32xf32>
    %122 = arith.addf %43, %121 : vector<16x32xf32>
    %c0_43 = arith.constant 0 : index
    %c0_44 = arith.constant 0 : index
    %c256 = arith.constant 256 : index
    %123 = vector.load %arg4[%c0_43, %c0_44, %c256] : memref<2x1x1024xf32, #tpu.memory_space<vmem>>, vector<1x1x32xf32>
    %124 = vector.shape_cast %123 : vector<1x1x32xf32> to vector<1x32xf32>
    %c0_45 = arith.constant 0 : index
    %c0_46 = arith.constant 0 : index
    %c384 = arith.constant 384 : index
    %125 = vector.load %arg4[%c0_45, %c0_46, %c384] : memref<2x1x1024xf32, #tpu.memory_space<vmem>>, vector<1x1x32xf32>
    %126 = vector.shape_cast %125 : vector<1x1x32xf32> to vector<1x32xf32>
    %cst_47 = arith.constant dense<0.000000e+00> : vector<16xf32>
    %127 = vector.multi_reduction <add>, %122, %cst_47 [1] : vector<16x32xf32> to vector<16xf32>
    %128 = vector.shape_cast %127 : vector<16xf32> to vector<16x1xf32>
    %cst_48 = arith.constant 3.200000e+01 : f32
    %129 = vector.broadcast %cst_48 : f32 to vector<16x1xf32>
    %130 = arith.divf %128, %129 : vector<16x1xf32>
    %131 = vector.broadcast %130 : vector<16x1xf32> to vector<16x32xf32>
    %132 = arith.subf %122, %131 : vector<16x32xf32>
    %133 = arith.mulf %132, %132 : vector<16x32xf32>
    %cst_49 = arith.constant dense<0.000000e+00> : vector<16xf32>
    %134 = vector.multi_reduction <add>, %133, %cst_49 [1] : vector<16x32xf32> to vector<16xf32>
    %135 = vector.shape_cast %134 : vector<16xf32> to vector<16x1xf32>
    %cst_50 = arith.constant 3.200000e+01 : f32
    %136 = vector.broadcast %cst_50 : f32 to vector<16x1xf32>
    %137 = arith.divf %135, %136 : vector<16x1xf32>
    %138 = vector.broadcast %130 : vector<16x1xf32> to vector<16x32xf32>
    %139 = arith.subf %122, %138 : vector<16x32xf32>
    %cst_51 = arith.constant 9.99999996E-13 : f32
    %140 = vector.broadcast %cst_51 : f32 to vector<16x1xf32>
    %141 = arith.addf %137, %140 : vector<16x1xf32>
    %142 = math.rsqrt %141 : vector<16x1xf32>
    %143 = vector.broadcast %142 : vector<16x1xf32> to vector<16x32xf32>
    %144 = arith.mulf %139, %143 : vector<16x32xf32>
    %145 = vector.broadcast %124 : vector<1x32xf32> to vector<16x32xf32>
    %146 = arith.mulf %144, %145 : vector<16x32xf32>
    %147 = vector.broadcast %126 : vector<1x32xf32> to vector<16x32xf32>
    %148 = arith.addf %146, %147 : vector<16x32xf32>
    %149 = arith.truncf %148 : vector<16x32xf32> to vector<16x32xbf16>
    %c0_52 = arith.constant 0 : index
    %c0_53 = arith.constant 0 : index
    %c256_54 = arith.constant 256 : index
    %150 = vector.load %arg2[%c0_52, %c0_53, %c256_54] : memref<2x32x384xbf16, #tpu.memory_space<vmem>>, vector<1x32x64xbf16>
    %151 = vector.shape_cast %150 : vector<1x32x64xbf16> to vector<32x64xbf16>
    %cst_55 = arith.constant dense<0.000000e+00> : vector<16x64xf32>
    %152 = tpu.matmul %149, %151, %cst_55 {dimension_numbers = #tpu.dot_dimension_numbers<[1], [0], [0], [1], [0, 0, 1, 1], [], []>} : vector<16x32xbf16>, vector<32x64xbf16>, vector<16x64xf32> -> vector<16x64xf32>
    %c0_56 = arith.constant 0 : index
    %c0_57 = arith.constant 0 : index
    %c512 = arith.constant 512 : index
    %153 = vector.load %arg4[%c0_56, %c0_57, %c512] : memref<2x1x1024xf32, #tpu.memory_space<vmem>>, vector<1x1x64xf32>
    %154 = vector.shape_cast %153 : vector<1x1x64xf32> to vector<1x64xf32>
    %155 = vector.broadcast %154 : vector<1x64xf32> to vector<16x64xf32>
    %156 = arith.addf %152, %155 : vector<16x64xf32>
    %cst_58 = arith.constant 5.000000e-01 : f32
    %157 = vector.broadcast %cst_58 : f32 to vector<16x64xf32>
    %158 = arith.mulf %157, %156 : vector<16x64xf32>
    %cst_59 = arith.constant 0.707106769 : f32
    %159 = vector.broadcast %cst_59 : f32 to vector<16x64xf32>
    %160 = arith.mulf %156, %159 : vector<16x64xf32>
    %161 = math.erf %160 : vector<16x64xf32>
    %cst_60 = arith.constant 1.000000e+00 : f32
    %162 = vector.broadcast %cst_60 : f32 to vector<16x64xf32>
    %163 = arith.addf %162, %161 : vector<16x64xf32>
    %164 = arith.mulf %158, %163 : vector<16x64xf32>
    %165 = arith.truncf %164 : vector<16x64xf32> to vector<16x64xbf16>
    %c0_61 = arith.constant 0 : index
    %c0_62 = arith.constant 0 : index
    %c0_63 = arith.constant 0 : index
    %166 = vector.load %arg3[%c0_61, %c0_62, %c0_63] : memref<2x64x32xbf16, #tpu.memory_space<vmem>>, vector<1x64x32xbf16>
    %167 = vector.shape_cast %166 : vector<1x64x32xbf16> to vector<64x32xbf16>
    %cst_64 = arith.constant dense<0.000000e+00> : vector<16x32xf32>
    %168 = tpu.matmul %165, %167, %cst_64 {dimension_numbers = #tpu.dot_dimension_numbers<[1], [0], [0], [1], [0, 0, 1, 1], [], []>} : vector<16x64xbf16>, vector<64x32xbf16>, vector<16x32xf32> -> vector<16x32xf32>
    %c0_65 = arith.constant 0 : index
    %c0_66 = arith.constant 0 : index
    %c640 = arith.constant 640 : index
    %169 = vector.load %arg4[%c0_65, %c0_66, %c640] : memref<2x1x1024xf32, #tpu.memory_space<vmem>>, vector<1x1x32xf32>
    %170 = vector.shape_cast %169 : vector<1x1x32xf32> to vector<1x32xf32>
    %171 = vector.broadcast %170 : vector<1x32xf32> to vector<16x32xf32>
    %172 = arith.addf %168, %171 : vector<16x32xf32>
    %173 = arith.addf %148, %172 : vector<16x32xf32>
    %c0_67 = arith.constant 0 : index
    %c0_68 = arith.constant 0 : index
    %c768 = arith.constant 768 : index
    %174 = vector.load %arg4[%c0_67, %c0_68, %c768] : memref<2x1x1024xf32, #tpu.memory_space<vmem>>, vector<1x1x32xf32>
    %175 = vector.shape_cast %174 : vector<1x1x32xf32> to vector<1x32xf32>
    %c0_69 = arith.constant 0 : index
    %c0_70 = arith.constant 0 : index
    %c896 = arith.constant 896 : index
    %176 = vector.load %arg4[%c0_69, %c0_70, %c896] : memref<2x1x1024xf32, #tpu.memory_space<vmem>>, vector<1x1x32xf32>
    %177 = vector.shape_cast %176 : vector<1x1x32xf32> to vector<1x32xf32>
    %cst_71 = arith.constant dense<0.000000e+00> : vector<16xf32>
    %178 = vector.multi_reduction <add>, %173, %cst_71 [1] : vector<16x32xf32> to vector<16xf32>
    %179 = vector.shape_cast %178 : vector<16xf32> to vector<16x1xf32>
    %cst_72 = arith.constant 3.200000e+01 : f32
    %180 = vector.broadcast %cst_72 : f32 to vector<16x1xf32>
    %181 = arith.divf %179, %180 : vector<16x1xf32>
    %182 = vector.broadcast %181 : vector<16x1xf32> to vector<16x32xf32>
    %183 = arith.subf %173, %182 : vector<16x32xf32>
    %184 = arith.mulf %183, %183 : vector<16x32xf32>
    %cst_73 = arith.constant dense<0.000000e+00> : vector<16xf32>
    %185 = vector.multi_reduction <add>, %184, %cst_73 [1] : vector<16x32xf32> to vector<16xf32>
    %186 = vector.shape_cast %185 : vector<16xf32> to vector<16x1xf32>
    %cst_74 = arith.constant 3.200000e+01 : f32
    %187 = vector.broadcast %cst_74 : f32 to vector<16x1xf32>
    %188 = arith.divf %186, %187 : vector<16x1xf32>
    %189 = vector.broadcast %181 : vector<16x1xf32> to vector<16x32xf32>
    %190 = arith.subf %173, %189 : vector<16x32xf32>
    %cst_75 = arith.constant 9.99999996E-13 : f32
    %191 = vector.broadcast %cst_75 : f32 to vector<16x1xf32>
    %192 = arith.addf %188, %191 : vector<16x1xf32>
    %193 = math.rsqrt %192 : vector<16x1xf32>
    %194 = vector.broadcast %193 : vector<16x1xf32> to vector<16x32xf32>
    %195 = arith.mulf %190, %194 : vector<16x32xf32>
    %196 = vector.broadcast %175 : vector<1x32xf32> to vector<16x32xf32>
    %197 = arith.mulf %195, %196 : vector<16x32xf32>
    %198 = vector.broadcast %177 : vector<1x32xf32> to vector<16x32xf32>
    %199 = arith.addf %197, %198 : vector<16x32xf32>
    %200 = arith.truncf %199 : vector<16x32xf32> to vector<16x32xbf16>
    %c1_76 = arith.constant 1 : index
    %c0_77 = arith.constant 0 : index
    %c0_78 = arith.constant 0 : index
    %201 = vector.load %arg2[%c1_76, %c0_77, %c0_78] : memref<2x32x384xbf16, #tpu.memory_space<vmem>>, vector<1x32x96xbf16>
    %202 = vector.shape_cast %201 : vector<1x32x96xbf16> to vector<32x96xbf16>
    %cst_79 = arith.constant dense<0.000000e+00> : vector<16x96xf32>
    %203 = tpu.matmul %200, %202, %cst_79 {dimension_numbers = #tpu.dot_dimension_numbers<[1], [0], [0], [1], [0, 0, 1, 1], [], []>} : vector<16x32xbf16>, vector<32x96xbf16>, vector<16x96xf32> -> vector<16x96xf32>
    %c1_80 = arith.constant 1 : index
    %c0_81 = arith.constant 0 : index
    %c0_82 = arith.constant 0 : index
    %204 = vector.load %arg4[%c1_80, %c0_81, %c0_82] : memref<2x1x1024xf32, #tpu.memory_space<vmem>>, vector<1x1x96xf32>
    %205 = vector.shape_cast %204 : vector<1x1x96xf32> to vector<1x96xf32>
    %206 = vector.broadcast %205 : vector<1x96xf32> to vector<16x96xf32>
    %207 = arith.addf %203, %206 : vector<16x96xf32>
    %208 = vector.extract_strided_slice %207 {offsets = [0, 0], sizes = [16, 32], strides = [1, 1]} : vector<16x96xf32> to vector<16x32xf32>
    %209 = vector.extract_strided_slice %207 {offsets = [0, 32], sizes = [16, 32], strides = [1, 1]} : vector<16x96xf32> to vector<16x32xf32>
    %210 = vector.extract_strided_slice %207 {offsets = [0, 64], sizes = [16, 32], strides = [1, 1]} : vector<16x96xf32> to vector<16x32xf32>
    %cst_83 = arith.constant 0.000000e+00 : f32
    %211 = vector.broadcast %cst_83 : f32 to vector<16x32xf32>
    %212 = vector.extract_strided_slice %208 {offsets = [0, 0], sizes = [16, 16], strides = [1, 1]} : vector<16x32xf32> to vector<16x16xf32>
    %cst_84 = arith.constant 2.500000e-01 : f32
    %213 = vector.broadcast %cst_84 : f32 to vector<16x16xf32>
    %214 = arith.mulf %212, %213 : vector<16x16xf32>
    %215 = vector.shape_cast %214 : vector<16x16xf32> to vector<2x8x16xf32>
    %216 = vector.extract_strided_slice %209 {offsets = [0, 0], sizes = [16, 16], strides = [1, 1]} : vector<16x32xf32> to vector<16x16xf32>
    %217 = vector.shape_cast %216 : vector<16x16xf32> to vector<2x8x16xf32>
    %218 = vector.extract_strided_slice %210 {offsets = [0, 0], sizes = [16, 16], strides = [1, 1]} : vector<16x32xf32> to vector<16x16xf32>
    %219 = vector.shape_cast %218 : vector<16x16xf32> to vector<2x8x16xf32>
    "tpu.trace_start"() <{level = 10 : i32, message = "bqd,bkd->bqk"}> : () -> ()
    %cst_85 = arith.constant dense<0.000000e+00> : vector<2x8x8xf32>
    %220 = tpu.matmul %215, %217, %cst_85 {dimension_numbers = #tpu.dot_dimension_numbers<[2], [2], [1], [1], [0, 0, 0, 1, 1, 1], [0], [0]>} : vector<2x8x16xf32>, vector<2x8x16xf32>, vector<2x8x8xf32> -> vector<2x8x8xf32>
    "tpu.trace_stop"() : () -> ()
    %221 = vector.broadcast %49 : vector<2x1x8xf32> to vector<2x8x8xf32>
    %222 = arith.addf %220, %221 : vector<2x8x8xf32>
    %cst_86 = arith.constant dense<0xFF800000> : vector<2x8xf32>
    %223 = vector.multi_reduction <maximumf>, %222, %cst_86 [2] : vector<2x8x8xf32> to vector<2x8xf32>
    %224 = vector.shape_cast %223 : vector<2x8xf32> to vector<2x8x1xf32>
    %225 = vector.broadcast %224 : vector<2x8x1xf32> to vector<2x8x8xf32>
    %226 = arith.subf %222, %225 : vector<2x8x8xf32>
    %227 = math.exp %226 : vector<2x8x8xf32>
    %cst_87 = arith.constant dense<0.000000e+00> : vector<2x8xf32>
    %228 = vector.multi_reduction <add>, %227, %cst_87 [2] : vector<2x8x8xf32> to vector<2x8xf32>
    %229 = vector.shape_cast %228 : vector<2x8xf32> to vector<2x8x1xf32>
    %230 = tpu.reciprocal %229 {approx = true} : vector<2x8x1xf32> -> vector<2x8x1xf32>
    %231 = vector.broadcast %230 : vector<2x8x1xf32> to vector<2x8x8xf32>
    %232 = arith.mulf %227, %231 : vector<2x8x8xf32>
    "tpu.trace_start"() <{level = 10 : i32, message = "bqk,bkd->bqd"}> : () -> ()
    %cst_88 = arith.constant dense<0.000000e+00> : vector<2x8x16xf32>
    %233 = tpu.matmul %232, %219, %cst_88 {dimension_numbers = #tpu.dot_dimension_numbers<[2], [1], [1], [2], [0, 0, 0, 1, 1, 2], [0], [0]>} : vector<2x8x8xf32>, vector<2x8x16xf32>, vector<2x8x16xf32> -> vector<2x8x16xf32>
    "tpu.trace_stop"() : () -> ()
    %234 = vector.shape_cast %233 : vector<2x8x16xf32> to vector<16x16xf32>
    %235 = arith.truncf %234 : vector<16x16xf32> to vector<16x16xbf16>
    %c1_89 = arith.constant 1 : index
    %c0_90 = arith.constant 0 : index
    %c128_91 = arith.constant 128 : index
    %236 = vector.load %arg2[%c1_89, %c0_90, %c128_91] : memref<2x32x384xbf16, #tpu.memory_space<vmem>>, vector<1x16x32xbf16>
    %237 = vector.shape_cast %236 : vector<1x16x32xbf16> to vector<16x32xbf16>
    %cst_92 = arith.constant dense<0.000000e+00> : vector<16x32xf32>
    %238 = tpu.matmul %235, %237, %cst_92 {dimension_numbers = #tpu.dot_dimension_numbers<[1], [0], [0], [1], [0, 0, 1, 1], [], []>} : vector<16x16xbf16>, vector<16x32xbf16>, vector<16x32xf32> -> vector<16x32xf32>
    %239 = arith.addf %211, %238 : vector<16x32xf32>
    %240 = vector.extract_strided_slice %208 {offsets = [0, 16], sizes = [16, 16], strides = [1, 1]} : vector<16x32xf32> to vector<16x16xf32>
    %cst_93 = arith.constant 2.500000e-01 : f32
    %241 = vector.broadcast %cst_93 : f32 to vector<16x16xf32>
    %242 = arith.mulf %240, %241 : vector<16x16xf32>
    %243 = vector.shape_cast %242 : vector<16x16xf32> to vector<2x8x16xf32>
    %244 = vector.extract_strided_slice %209 {offsets = [0, 16], sizes = [16, 16], strides = [1, 1]} : vector<16x32xf32> to vector<16x16xf32>
    %245 = vector.shape_cast %244 : vector<16x16xf32> to vector<2x8x16xf32>
    %246 = vector.extract_strided_slice %210 {offsets = [0, 16], sizes = [16, 16], strides = [1, 1]} : vector<16x32xf32> to vector<16x16xf32>
    %247 = vector.shape_cast %246 : vector<16x16xf32> to vector<2x8x16xf32>
    "tpu.trace_start"() <{level = 10 : i32, message = "bqd,bkd->bqk"}> : () -> ()
    %cst_94 = arith.constant dense<0.000000e+00> : vector<2x8x8xf32>
    %248 = tpu.matmul %243, %245, %cst_94 {dimension_numbers = #tpu.dot_dimension_numbers<[2], [2], [1], [1], [0, 0, 0, 1, 1, 1], [0], [0]>} : vector<2x8x16xf32>, vector<2x8x16xf32>, vector<2x8x8xf32> -> vector<2x8x8xf32>
    "tpu.trace_stop"() : () -> ()
    %249 = vector.broadcast %49 : vector<2x1x8xf32> to vector<2x8x8xf32>
    %250 = arith.addf %248, %249 : vector<2x8x8xf32>
    %cst_95 = arith.constant dense<0xFF800000> : vector<2x8xf32>
    %251 = vector.multi_reduction <maximumf>, %250, %cst_95 [2] : vector<2x8x8xf32> to vector<2x8xf32>
    %252 = vector.shape_cast %251 : vector<2x8xf32> to vector<2x8x1xf32>
    %253 = vector.broadcast %252 : vector<2x8x1xf32> to vector<2x8x8xf32>
    %254 = arith.subf %250, %253 : vector<2x8x8xf32>
    %255 = math.exp %254 : vector<2x8x8xf32>
    %cst_96 = arith.constant dense<0.000000e+00> : vector<2x8xf32>
    %256 = vector.multi_reduction <add>, %255, %cst_96 [2] : vector<2x8x8xf32> to vector<2x8xf32>
    %257 = vector.shape_cast %256 : vector<2x8xf32> to vector<2x8x1xf32>
    %258 = tpu.reciprocal %257 {approx = true} : vector<2x8x1xf32> -> vector<2x8x1xf32>
    %259 = vector.broadcast %258 : vector<2x8x1xf32> to vector<2x8x8xf32>
    %260 = arith.mulf %255, %259 : vector<2x8x8xf32>
    "tpu.trace_start"() <{level = 10 : i32, message = "bqk,bkd->bqd"}> : () -> ()
    %cst_97 = arith.constant dense<0.000000e+00> : vector<2x8x16xf32>
    %261 = tpu.matmul %260, %247, %cst_97 {dimension_numbers = #tpu.dot_dimension_numbers<[2], [1], [1], [2], [0, 0, 0, 1, 1, 2], [0], [0]>} : vector<2x8x8xf32>, vector<2x8x16xf32>, vector<2x8x16xf32> -> vector<2x8x16xf32>
    "tpu.trace_stop"() : () -> ()
    %262 = vector.shape_cast %261 : vector<2x8x16xf32> to vector<16x16xf32>
    %263 = arith.truncf %262 : vector<16x16xf32> to vector<16x16xbf16>
    %c1_98 = arith.constant 1 : index
    %c16_99 = arith.constant 16 : index
    %c128_100 = arith.constant 128 : index
    %264 = vector.load %arg2[%c1_98, %c16_99, %c128_100] : memref<2x32x384xbf16, #tpu.memory_space<vmem>>, vector<1x16x32xbf16>
    %265 = vector.shape_cast %264 : vector<1x16x32xbf16> to vector<16x32xbf16>
    %cst_101 = arith.constant dense<0.000000e+00> : vector<16x32xf32>
    %266 = tpu.matmul %263, %265, %cst_101 {dimension_numbers = #tpu.dot_dimension_numbers<[1], [0], [0], [1], [0, 0, 1, 1], [], []>} : vector<16x16xbf16>, vector<16x32xbf16>, vector<16x32xf32> -> vector<16x32xf32>
    %267 = arith.addf %239, %266 : vector<16x32xf32>
    %c1_102 = arith.constant 1 : index
    %c0_103 = arith.constant 0 : index
    %c128_104 = arith.constant 128 : index
    %268 = vector.load %arg4[%c1_102, %c0_103, %c128_104] : memref<2x1x1024xf32, #tpu.memory_space<vmem>>, vector<1x1x32xf32>
    %269 = vector.shape_cast %268 : vector<1x1x32xf32> to vector<1x32xf32>
    %270 = vector.broadcast %269 : vector<1x32xf32> to vector<16x32xf32>
    %271 = arith.addf %267, %270 : vector<16x32xf32>
    %272 = arith.addf %199, %271 : vector<16x32xf32>
    %c1_105 = arith.constant 1 : index
    %c0_106 = arith.constant 0 : index
    %c256_107 = arith.constant 256 : index
    %273 = vector.load %arg4[%c1_105, %c0_106, %c256_107] : memref<2x1x1024xf32, #tpu.memory_space<vmem>>, vector<1x1x32xf32>
    %274 = vector.shape_cast %273 : vector<1x1x32xf32> to vector<1x32xf32>
    %c1_108 = arith.constant 1 : index
    %c0_109 = arith.constant 0 : index
    %c384_110 = arith.constant 384 : index
    %275 = vector.load %arg4[%c1_108, %c0_109, %c384_110] : memref<2x1x1024xf32, #tpu.memory_space<vmem>>, vector<1x1x32xf32>
    %276 = vector.shape_cast %275 : vector<1x1x32xf32> to vector<1x32xf32>
    %cst_111 = arith.constant dense<0.000000e+00> : vector<16xf32>
    %277 = vector.multi_reduction <add>, %272, %cst_111 [1] : vector<16x32xf32> to vector<16xf32>
    %278 = vector.shape_cast %277 : vector<16xf32> to vector<16x1xf32>
    %cst_112 = arith.constant 3.200000e+01 : f32
    %279 = vector.broadcast %cst_112 : f32 to vector<16x1xf32>
    %280 = arith.divf %278, %279 : vector<16x1xf32>
    %281 = vector.broadcast %280 : vector<16x1xf32> to vector<16x32xf32>
    %282 = arith.subf %272, %281 : vector<16x32xf32>
    %283 = arith.mulf %282, %282 : vector<16x32xf32>
    %cst_113 = arith.constant dense<0.000000e+00> : vector<16xf32>
    %284 = vector.multi_reduction <add>, %283, %cst_113 [1] : vector<16x32xf32> to vector<16xf32>
    %285 = vector.shape_cast %284 : vector<16xf32> to vector<16x1xf32>
    %cst_114 = arith.constant 3.200000e+01 : f32
    %286 = vector.broadcast %cst_114 : f32 to vector<16x1xf32>
    %287 = arith.divf %285, %286 : vector<16x1xf32>
    %288 = vector.broadcast %280 : vector<16x1xf32> to vector<16x32xf32>
    %289 = arith.subf %272, %288 : vector<16x32xf32>
    %cst_115 = arith.constant 9.99999996E-13 : f32
    %290 = vector.broadcast %cst_115 : f32 to vector<16x1xf32>
    %291 = arith.addf %287, %290 : vector<16x1xf32>
    %292 = math.rsqrt %291 : vector<16x1xf32>
    %293 = vector.broadcast %292 : vector<16x1xf32> to vector<16x32xf32>
    %294 = arith.mulf %289, %293 : vector<16x32xf32>
    %295 = vector.broadcast %274 : vector<1x32xf32> to vector<16x32xf32>
    %296 = arith.mulf %294, %295 : vector<16x32xf32>
    %297 = vector.broadcast %276 : vector<1x32xf32> to vector<16x32xf32>
    %298 = arith.addf %296, %297 : vector<16x32xf32>
    %299 = arith.truncf %298 : vector<16x32xf32> to vector<16x32xbf16>
    %c1_116 = arith.constant 1 : index
    %c0_117 = arith.constant 0 : index
    %c256_118 = arith.constant 256 : index
    %300 = vector.load %arg2[%c1_116, %c0_117, %c256_118] : memref<2x32x384xbf16, #tpu.memory_space<vmem>>, vector<1x32x64xbf16>
    %301 = vector.shape_cast %300 : vector<1x32x64xbf16> to vector<32x64xbf16>
    %cst_119 = arith.constant dense<0.000000e+00> : vector<16x64xf32>
    %302 = tpu.matmul %299, %301, %cst_119 {dimension_numbers = #tpu.dot_dimension_numbers<[1], [0], [0], [1], [0, 0, 1, 1], [], []>} : vector<16x32xbf16>, vector<32x64xbf16>, vector<16x64xf32> -> vector<16x64xf32>
    %c1_120 = arith.constant 1 : index
    %c0_121 = arith.constant 0 : index
    %c512_122 = arith.constant 512 : index
    %303 = vector.load %arg4[%c1_120, %c0_121, %c512_122] : memref<2x1x1024xf32, #tpu.memory_space<vmem>>, vector<1x1x64xf32>
    %304 = vector.shape_cast %303 : vector<1x1x64xf32> to vector<1x64xf32>
    %305 = vector.broadcast %304 : vector<1x64xf32> to vector<16x64xf32>
    %306 = arith.addf %302, %305 : vector<16x64xf32>
    %cst_123 = arith.constant 5.000000e-01 : f32
    %307 = vector.broadcast %cst_123 : f32 to vector<16x64xf32>
    %308 = arith.mulf %307, %306 : vector<16x64xf32>
    %cst_124 = arith.constant 0.707106769 : f32
    %309 = vector.broadcast %cst_124 : f32 to vector<16x64xf32>
    %310 = arith.mulf %306, %309 : vector<16x64xf32>
    %311 = math.erf %310 : vector<16x64xf32>
    %cst_125 = arith.constant 1.000000e+00 : f32
    %312 = vector.broadcast %cst_125 : f32 to vector<16x64xf32>
    %313 = arith.addf %312, %311 : vector<16x64xf32>
    %314 = arith.mulf %308, %313 : vector<16x64xf32>
    %315 = arith.truncf %314 : vector<16x64xf32> to vector<16x64xbf16>
    %c1_126 = arith.constant 1 : index
    %c0_127 = arith.constant 0 : index
    %c0_128 = arith.constant 0 : index
    %316 = vector.load %arg3[%c1_126, %c0_127, %c0_128] : memref<2x64x32xbf16, #tpu.memory_space<vmem>>, vector<1x64x32xbf16>
    %317 = vector.shape_cast %316 : vector<1x64x32xbf16> to vector<64x32xbf16>
    %cst_129 = arith.constant dense<0.000000e+00> : vector<16x32xf32>
    %318 = tpu.matmul %315, %317, %cst_129 {dimension_numbers = #tpu.dot_dimension_numbers<[1], [0], [0], [1], [0, 0, 1, 1], [], []>} : vector<16x64xbf16>, vector<64x32xbf16>, vector<16x32xf32> -> vector<16x32xf32>
    %c1_130 = arith.constant 1 : index
    %c0_131 = arith.constant 0 : index
    %c640_132 = arith.constant 640 : index
    %319 = vector.load %arg4[%c1_130, %c0_131, %c640_132] : memref<2x1x1024xf32, #tpu.memory_space<vmem>>, vector<1x1x32xf32>
    %320 = vector.shape_cast %319 : vector<1x1x32xf32> to vector<1x32xf32>
    %321 = vector.broadcast %320 : vector<1x32xf32> to vector<16x32xf32>
    %322 = arith.addf %318, %321 : vector<16x32xf32>
    %323 = arith.addf %298, %322 : vector<16x32xf32>
    %c1_133 = arith.constant 1 : index
    %c0_134 = arith.constant 0 : index
    %c768_135 = arith.constant 768 : index
    %324 = vector.load %arg4[%c1_133, %c0_134, %c768_135] : memref<2x1x1024xf32, #tpu.memory_space<vmem>>, vector<1x1x32xf32>
    %325 = vector.shape_cast %324 : vector<1x1x32xf32> to vector<1x32xf32>
    %c1_136 = arith.constant 1 : index
    %c0_137 = arith.constant 0 : index
    %c896_138 = arith.constant 896 : index
    %326 = vector.load %arg4[%c1_136, %c0_137, %c896_138] : memref<2x1x1024xf32, #tpu.memory_space<vmem>>, vector<1x1x32xf32>
    %327 = vector.shape_cast %326 : vector<1x1x32xf32> to vector<1x32xf32>
    %cst_139 = arith.constant dense<0.000000e+00> : vector<16xf32>
    %328 = vector.multi_reduction <add>, %323, %cst_139 [1] : vector<16x32xf32> to vector<16xf32>
    %329 = vector.shape_cast %328 : vector<16xf32> to vector<16x1xf32>
    %cst_140 = arith.constant 3.200000e+01 : f32
    %330 = vector.broadcast %cst_140 : f32 to vector<16x1xf32>
    %331 = arith.divf %329, %330 : vector<16x1xf32>
    %332 = vector.broadcast %331 : vector<16x1xf32> to vector<16x32xf32>
    %333 = arith.subf %323, %332 : vector<16x32xf32>
    %334 = arith.mulf %333, %333 : vector<16x32xf32>
    %cst_141 = arith.constant dense<0.000000e+00> : vector<16xf32>
    %335 = vector.multi_reduction <add>, %334, %cst_141 [1] : vector<16x32xf32> to vector<16xf32>
    %336 = vector.shape_cast %335 : vector<16xf32> to vector<16x1xf32>
    %cst_142 = arith.constant 3.200000e+01 : f32
    %337 = vector.broadcast %cst_142 : f32 to vector<16x1xf32>
    %338 = arith.divf %336, %337 : vector<16x1xf32>
    %339 = vector.broadcast %331 : vector<16x1xf32> to vector<16x32xf32>
    %340 = arith.subf %323, %339 : vector<16x32xf32>
    %cst_143 = arith.constant 9.99999996E-13 : f32
    %341 = vector.broadcast %cst_143 : f32 to vector<16x1xf32>
    %342 = arith.addf %338, %341 : vector<16x1xf32>
    %343 = math.rsqrt %342 : vector<16x1xf32>
    %344 = vector.broadcast %343 : vector<16x1xf32> to vector<16x32xf32>
    %345 = arith.mulf %340, %344 : vector<16x32xf32>
    %346 = vector.broadcast %325 : vector<1x32xf32> to vector<16x32xf32>
    %347 = arith.mulf %345, %346 : vector<16x32xf32>
    %348 = vector.broadcast %327 : vector<1x32xf32> to vector<16x32xf32>
    %349 = arith.addf %347, %348 : vector<16x32xf32>
    %350 = vector.shape_cast %349 : vector<16x32xf32> to vector<2x8x32xf32>
    %351 = vector.extract_strided_slice %350 {offsets = [0, 0, 0], sizes = [2, 1, 32], strides = [1, 1, 1]} : vector<2x8x32xf32> to vector<2x1x32xf32>
    %352 = vector.shape_cast %351 : vector<2x1x32xf32> to vector<2x32xf32>
    %c96 = arith.constant 96 : index
    %c0_144 = arith.constant 0 : index
    %353 = vector.load %arg1[%c96, %c0_144] : memref<176x32xf32, #tpu.memory_space<vmem>>, vector<32x32xf32>
    %cst_145 = arith.constant dense<0.000000e+00> : vector<2x32xf32>
    %354 = tpu.matmul %352, %353, %cst_145 {dimension_numbers = #tpu.dot_dimension_numbers<[1], [0], [0], [1], [0, 0, 1, 1], [], []>} : vector<2x32xf32>, vector<32x32xf32>, vector<2x32xf32> -> vector<2x32xf32>
    %c128_146 = arith.constant 128 : index
    %c0_147 = arith.constant 0 : index
    %355 = vector.load %arg1[%c128_146, %c0_147] : memref<176x32xf32, #tpu.memory_space<vmem>>, vector<1x32xf32>
    %356 = vector.broadcast %355 : vector<1x32xf32> to vector<2x32xf32>
    %357 = arith.addf %354, %356 : vector<2x32xf32>
    %358 = math.tanh %357 : vector<2x32xf32>
    %c136 = arith.constant 136 : index
    %c0_148 = arith.constant 0 : index
    %359 = vector.load %arg1[%c136, %c0_148] : memref<176x32xf32, #tpu.memory_space<vmem>>, vector<32x32xf32>
    %cst_149 = arith.constant dense<0.000000e+00> : vector<2x32xf32>
    %360 = tpu.matmul %358, %359, %cst_149 {dimension_numbers = #tpu.dot_dimension_numbers<[1], [0], [0], [1], [0, 0, 1, 1], [], []>} : vector<2x32xf32>, vector<32x32xf32>, vector<2x32xf32> -> vector<2x32xf32>
    %c168 = arith.constant 168 : index
    %c0_150 = arith.constant 0 : index
    %361 = vector.load %arg1[%c168, %c0_150] : memref<176x32xf32, #tpu.memory_space<vmem>>, vector<1x32xf32>
    %362 = vector.broadcast %361 : vector<1x32xf32> to vector<2x32xf32>
    %363 = arith.addf %360, %362 : vector<2x32xf32>
    %364 = vector.extract_strided_slice %363 {offsets = [0, 0], sizes = [2, 4], strides = [1, 1]} : vector<2x32xf32> to vector<2x4xf32>
    %cst_151 = arith.constant dense<0xFF800000> : vector<2xf32>
    %365 = vector.multi_reduction <maximumf>, %364, %cst_151 [1] : vector<2x4xf32> to vector<2xf32>
    %366 = vector.shape_cast %365 : vector<2xf32> to vector<2x1xf32>
    %367 = vector.broadcast %366 : vector<2x1xf32> to vector<2x4xf32>
    %368 = arith.subf %364, %367 : vector<2x4xf32>
    %369 = math.exp %368 : vector<2x4xf32>
    %cst_152 = arith.constant dense<0.000000e+00> : vector<2xf32>
    %370 = vector.multi_reduction <add>, %369, %cst_152 [1] : vector<2x4xf32> to vector<2xf32>
    %371 = vector.shape_cast %370 : vector<2xf32> to vector<2x1xf32>
    %372 = math.log %371 : vector<2x1xf32>
    %373 = arith.addf %372, %366 : vector<2x1xf32>
    %374 = tpu.iota {dimensions = array<i32: 1>} : vector<2x4xi32>
    %375 = vector.broadcast %3 : vector<2x1xi32> to vector<2x4xi32>
    %376 = arith.cmpi eq, %374, %375 : vector<2x4xi32>
    %cst_153 = arith.constant 0.000000e+00 : f32
    %377 = vector.broadcast %cst_153 : f32 to vector<2x4xf32>
    %378 = arith.select %376, %364, %377 : vector<2x4xi1>, vector<2x4xf32>
    %cst_154 = arith.constant dense<0.000000e+00> : vector<2xf32>
    %379 = vector.multi_reduction <add>, %378, %cst_154 [1] : vector<2x4xf32> to vector<2xf32>
    %380 = vector.shape_cast %379 : vector<2xf32> to vector<2x1xf32>
    %c-100_i32 = arith.constant -100 : i32
    %381 = vector.broadcast %c-100_i32 : i32 to vector<2x1xi32>
    %382 = arith.cmpi ne, %3, %381 : vector<2x1xi32>
    %383 = arith.extui %382 : vector<2x1xi1> to vector<2x1xi32>
    %384 = arith.sitofp %383 : vector<2x1xi32> to vector<2x1xf32>
    %385 = arith.subf %373, %380 : vector<2x1xf32>
    %386 = arith.mulf %385, %384 : vector<2x1xf32>
    %cst_155 = arith.constant dense<0.000000e+00> : vector<1xf32>
    %387 = vector.multi_reduction <add>, %386, %cst_155 [0] : vector<2x1xf32> to vector<1xf32>
    %388 = vector.shape_cast %387 : vector<1xf32> to vector<1x1xf32>
    %cst_156 = arith.constant dense<0.000000e+00> : vector<1xf32>
    %389 = vector.multi_reduction <add>, %384, %cst_156 [0] : vector<2x1xf32> to vector<1xf32>
    %390 = vector.shape_cast %389 : vector<1xf32> to vector<1x1xf32>
    %391 = arith.divf %388, %390 : vector<1x1xf32>
    %cst_157 = arith.constant 0.000000e+00 : f32
    %392 = vector.broadcast %cst_157 : f32 to vector<8x128xf32>
    %c0_158 = arith.constant 0 : index
    %c0_159 = arith.constant 0 : index
    %393 = vector.load %arg5[%c0_158, %c0_159] : memref<8x128xf32, #tpu.memory_space<vmem>>, vector<8x128xf32>
    tpu.vector_store %arg5[%c0_158, %c0_159], %392 {strides = array<i32>} : memref<8x128xf32, #tpu.memory_space<vmem>>, vector<8x128xf32>,
    %c0_160 = arith.constant 0 : index
    %c0_161 = arith.constant 0 : index
    %394 = vector.load %arg5[%c0_160, %c0_161] : memref<8x128xf32, #tpu.memory_space<vmem>>, vector<2x4xf32>
    tpu.vector_store %arg5[%c0_160, %c0_161], %364 {strides = array<i32>} : memref<8x128xf32, #tpu.memory_space<vmem>>, vector<2x4xf32>,
    %c2_162 = arith.constant 2 : index
    %c0_163 = arith.constant 0 : index
    %395 = vector.load %arg5[%c2_162, %c0_163] : memref<8x128xf32, #tpu.memory_space<vmem>>, vector<1x1xf32>
    tpu.vector_store %arg5[%c2_162, %c0_163], %391 {strides = array<i32>} : memref<8x128xf32, #tpu.memory_space<vmem>>, vector<1x1xf32>,
    return
  }
}

</mosaic_0001>

<bundles_post_ra>
// kernel: dorne_forward.1
= control target key start
LH: loop header
LB: loop body
LE: loop exit
PB: predicated region body
PF: predicated region fallthrough
CT: control target
= control target key end

     0   :  { %v1911_v0 = vmov 0   ;;  %v26_v10 = vlaneseq  ;;  %vm47_vm0 = vcmask 457728   ;;  %v1912_v13 = vmov 0.0   ;;  %s1914_s29 = smov 96   ;;  %s1915_s30 = smov 64   ;;  %s2412_s0 = inlined_call_operand.vmem [shape: s32[16,3], index: 0, kind: input, shape index: {}]   ;;  %s2413_s1 = inlined_call_operand.vmem [shape: f32[176,32], index: 1, kind: input, shape index: {}]   ;;  %s2414_s4 = inlined_call_operand.vmem [shape: f32[2,1,1024], index: 4, kind: input, shape index: {}]   ;;  %s2415_s2 = inlined_call_operand.vmem [shape: bf16[2,32,384], index: 2, kind: input, shape index: {}]   ;;  %s2416_s3 = inlined_call_operand.vmem [shape: bf16[2,64,32], index: 3, kind: input, shape index: {}]   ;;  %s2417_s5 = inlined_call_operand.vmem [shape: f32[8,128], index: 5, kind: output, shape index: {}]  }
   0x1   :  { %1806 = vset.pattern.permute.xlu0 %v1911_v0  ;;  %v1955_v1 = vld [vmem:[%s2412_s0] sm:$0xff]  ;;  %v46_v2 = vld [vmem:[%s2413_s1 + $0x30] sm:$0xff]  ;;  %v45_v3 = vld [vmem:[%s2413_s1 + $0x28] sm:$0xff]  ;;  %vm85_vm3 = vcmask 261120   ;;  %v1913_v26 = vmov 32.0   ;;  %vm209_vm11 = vcmask 130048   ;;  %1610 = vst [vmem:[%s2417_s5] sm:$0xff] %v1912_v13 }
   0x2   :  { %29 = vperm.xlu0 %1806, %v1955_v1   ;;  %63 = vmatpush.msra.mxu0 %v46_v2  ;;  %v44_v4 = vld [vmem:[%s2413_s1 + $0x20] sm:$0xff]  ;;  %v43_v5 = vld [vmem:[%s2413_s1 + $0x18] sm:$0xff]  ;;  %v1973_v6 = vld [vmem:[%s2412_s0 + $0x8] sm:$0xff]  ;;  %v1985_v11 = vand.u32 127, %v26_v10  ;;  %1841 = vrcp.f32 %v1913_v26  ;;  %vm275_vm12 = vcmask 64512   ;;  %s1917_s6 = smov 112  }
   0x3   :  { %v42_v7 = vld [vmem:[%s2413_s1 + $0x10] sm:$0xff]  ;;  %v41_v8 = vld [vmem:[%s2413_s1 + $0x8] sm:$0xff]  ;;  %v40_v9 = vld [vmem:[%s2413_s1] sm:$0xff]  ;;  %s1918_s7 = smov 80   ;;  %s1919_s8 = smov 48  }
   0x4   :  { %64 = vmatpush.msra.mxu0 %v45_v3  ;;  %v1820_v17 = vld [vmem:[%s2413_s1 + $0x48] ss:$0 sm:$0xff]  ;;  %v77_v18 = vld [vmem:[%s2413_s1 + $0x38] sm:$0xff]  ;;  %v1776_v44 = vld [vmem:[%s2415_s2 + $0x20] sm:$0xf0] }
   0x5   :  { %v80_v19 = vadd.f32 %v1820_v17, %v77_v18  ;;  %v1632_v43 = vld [vmem:[%s2415_s2 + $0x18] sm:$0xf]  ;;  %v1628_v46 = vld [vmem:[%s2415_s2] sm:$0xf]  ;;  %v1775_v47 = vld [vmem:[%s2415_s2 + $0x8] sm:$0xf0] }
   0x6   :  { %65 = vmatpush.msra.mxu0 %v44_v4  ;;  %v1633_v45 = vor.u32 %v1776_v44, %v1632_v43  ;;  %v1629_v49 = vor.u32 %v1775_v47, %v1628_v46  ;;  %v1823_v18 = vld [vmem:[%s2414_s4] ss:$0 sm:$0xff] }
   0x8   :  { %66 = vmatpush.msra.mxu0 %v43_v5  ;;  %v1842_v27 = vpop.eup %1841  ;;  %177 = vmatpush.bf16.msra.mxu1 %v1633_v45  ;;  %v1821_v5 = vld [vmem:[%s2413_s1 + $0x50] ss:$0 sm:$0xff] }
   0x9   :  { %v93_v28 = vmul.f32 32.0, %v1842_v27  ;;  %vm97_vm4 = vweird.f32 %v1842_v27 }
   0xa   :  { %32 = vperm.xlu0 %1806, %v1973_v6   ;;  %67 = vmatpush.msra.mxu0 %v42_v7 }
   0xb   :  { %v94_v29 = vsub.f32 1.0, %v93_v28 }
   0xc   :  { %68 = vmatpush.msra.mxu0 %v41_v8  ;;  %178 = vmatpush.bf16.msra.mxu1 %v1629_v49 }
   0xd   :  { %v95_v30 = vmul.f32 %v1842_v27, %v94_v29  ;;  %v1916_v29 = vmov 1  }
   0xe   :  { %69 = vmatpush.msra.mxu0 %v40_v9  ;;  %1807 = vset.pattern.permute.xlu2 %v1916_v29 }
   0xf   :  { %v96_v31 = vadd.f32 %v1842_v27, %v95_v30 }
  0x11   :  { %v1999_v32 = vsel %vm97_vm4, %v1842_v27, %v96_v31 }
  0x12   :  { %1808 = vset.pattern.permute.xlu0 %v1916_v29 }
  0x74   :  { %v30_v12 = vpop.permute.xlu0 %29 }
  0x75   :  { %vm34_vm1 = vcmp.eq.s32.totalorder %v1985_v11, %v30_v12  ;;  %v1822_v12 = vld [vmem:[%s2413_s1 + $0x58] ss:$0 sm:$0xff] }
  0x76   :  { %v1622_v14 = vsel %vm34_vm1, 1.0, %v1912_v13 }
  0x77   :  { %1624 = vmatmul.msk.f32.vlgmr.msra.gmra.mxu0 %vm47_vm0, %v1622_v14 }
  0x7c   :  { %v33_v15 = vpop.permute.xlu0 %32 }
  0x7d   :  { %vm35_vm2 = vcmp.eq.s32.totalorder %v1985_v11, %v33_v15 }
  0x7e   :  { %v1623_v16 = vsel %vm35_vm2, 1.0, %v1912_v13 }
  0x7f   :  { %1625 = vmatmul.msk.f32.gmra.mxu0 %vm47_vm0, %v1623_v16 }
  0xf4   :  { %v71_v20 = vpop.f32.mrf.mxu0 }
  0xf5   :  { %v81_v21 = vadd.f32 %v80_v19, %v71_v20 }
  0xf7   :  { %v86_v22 = vsel %vm85_vm3, %v81_v21, 0.0 }
  0xf8   :  { %87 = vadd.xlane.f32.xlu1 %v86_v22 }
  0xfc   :  { %v74_v23 = vpop.f32.mrf.mxu0 }
  0xfd   :  { %v82_v24 = vadd.f32 %v80_v19, %v74_v23  ;;  %v23_v23 = vcvt.s32.f32 %v1955_v1 }
  0xff   :  { %v89_v25 = vsel %vm85_vm3, %v82_v24, 0.0 }
 0x100   :  { %90 = vadd.xlane.f32.xlu1 %v89_v25  ;;  %v143_v25 = vsub.f32 1.0, %v23_v23 }
 0x102   :  { %v145_v27 = vmul.f32 -1e+09, %v143_v25 }
 0x16b   :  { %v88_v33 = vpop.xlane.xlu1 %87 }
 0x16c   :  { %v99_v34 = vmul.f32 %v1999_v32, %v88_v33 }
 0x16e   :  { %v101_v35 = vsub.f32 %v81_v21, %v99_v34 }
 0x170   :  { %v103_v36 = vmul.f32 %v101_v35, %v101_v35 }
 0x172   :  { %v105_v37 = vsel %vm85_vm3, %v103_v36, 0.0 }
 0x173   :  { %106 = vadd.xlane.f32.xlu2 %v105_v37  ;;  %v91_v38 = vpop.xlane.xlu1 %90 }
 0x174   :  { %v100_v39 = vmul.f32 %v1999_v32, %v91_v38 }
 0x176   :  { %v102_v40 = vsub.f32 %v82_v24, %v100_v39  ;;  %v24_v24 = vcvt.s32.f32 %v1973_v6 }
 0x178   :  { %v104_v41 = vmul.f32 %v102_v40, %v102_v40  ;;  %v144_v26 = vsub.f32 1.0, %v24_v24 }
 0x17a   :  { %v108_v42 = vsel %vm85_vm3, %v104_v41, 0.0  ;;  %v146_v28 = vmul.f32 -1e+09, %v144_v26 }
 0x17b   :  { %109 = vadd.xlane.f32.xlu2 %v108_v42 }
 0x193   :  { %240 = vperm.xlu2 %1807, %v146_v28  }
 0x1e6   :  { %v107_v48 = vpop.xlane.xlu2 %106 }
 0x1e7   :  { %v111_v50 = vmul.f32 %v107_v48, %v1999_v32 }
 0x1e9   :  { %v113_v51 = vadd.f32 1e-12, %v111_v50 }
 0x1eb   :  { %1843 = vrsqrt.f32 %v113_v51  ;;  %vm121_vm6 = vweird.f32 %v113_v51 }
 0x1ee   :  { %v110_v52 = vpop.xlane.xlu2 %109 }
 0x1ef   :  { %v112_v53 = vmul.f32 %v110_v52, %v1999_v32 }
 0x1f1   :  { %v1844_v54 = vpop.eup %1843  ;;  %v114_v55 = vadd.f32 1e-12, %v112_v53 }
 0x1f2   :  { %v116_v56 = vmul.f32 %v1844_v54, %v113_v51  ;;  %vm122_vm5 = vweird.f32 %v1844_v54 }
 0x1f3   :  { %1845 = vrsqrt.f32 %v114_v55  ;;  %vm123_vm7 = vmor %vm121_vm6, %vm122_vm5  ;;  %vm131_vm9 = vweird.f32 %v114_v55 }
 0x1f4   :  { %v117_v57 = vmul.f32 %v1844_v54, %v116_v56 }
 0x1f6   :  { %v118_v58 = vmul.f32 0.5, %v117_v57  ;;  %v241_v38 = vpop.permute.xlu2 %240 }
 0x1f8   :  { %v119_v59 = vsub.f32 1.5, %v118_v58 }
 0x1f9   :  { %v1846_v60 = vpop.eup %1845 }
 0x1fa   :  { %v120_v61 = vmul.f32 %v1844_v54, %v119_v59  ;;  %v126_v62 = vmul.f32 %v1846_v60, %v114_v55  ;;  %vm132_vm8 = vweird.f32 %v1846_v60 }
 0x1fb   :  { %vm133_vm10 = vmor %vm131_vm9, %vm132_vm8 }
 0x1fc   :  { %v127_v63 = vmul.f32 %v1846_v60, %v126_v62  ;;  %v124_v0 = vsel %vm123_vm7, %v1844_v54, %v120_v61 }
 0x1fd   :  { %v135_v4 = vmul.f32 %v124_v0, %v101_v35 }
 0x1fe   :  { %v128_v2 = vmul.f32 0.5, %v127_v63 }
 0x1ff   :  { %v138_v10 = vmul.f32 %v1821_v5, %v135_v4 }
 0x200   :  { %v129_v3 = vsub.f32 1.5, %v128_v2 }
 0x201   :  { %v2025_v15 = vadd.f32 %v1822_v12, %v138_v10 }
 0x202   :  { %v130_v7 = vmul.f32 %v1846_v60, %v129_v3 }
 0x204   :  { %v134_v8 = vsel %vm133_vm10, %v1846_v60, %v130_v7 }
 0x205   :  { %v136_v9 = vmul.f32 %v134_v8, %v102_v40  ;;  %v2059_v40 = vperm.slane %v241_v38, %v1985_v11  ;;  %v1778_v38 = vld [vmem:[%s2415_s2 + $0x24] sm:$0xf0] }
 0x207   :  { %v139_v14 = vmul.f32 %v1821_v5, %v136_v9 }
 0x209   :  { %v2027_v16 = vadd.f32 %v1822_v12, %v139_v14 }
 0x20b   :  { %v147_v17 = vpack.c.bf16 %v2027_v16, %v2025_v15 }
 0x20d   :  { %1634 = vmatmul.msk.bf16.vlgmr.msra.gmra.mxu1 %vm85_vm3, %v147_v17 }
 0x28a   :  { %v180_v19 = vpop.f32.mrf.mxu1 }
 0x28b   :  { %v2035_v20 = vadd.f32 %v1823_v18, %v180_v19 }
 0x28d   :  { %188 = vrot.lane.b32.xlu1 %v2035_v20, %s1914_s29  ;;  %v185_v31 = vmul.f32 0.25, %v2035_v20 }
 0x292   :  { %v182_v21 = vpop.f32.mrf.mxu1 }
 0x293   :  { %v2039_v22 = vadd.f32 %v1823_v18, %v182_v21 }
 0x295   :  { %236 = vrot.lane.b32.xlu0 %v2039_v22, %s1914_s29  ;;  %298 = vrot.lane.b32.xlu1 %v2035_v20, %s1915_s30  ;;  %v186_v6 = vmul.f32 0.25, %v2039_v22 }
 0x29d   :  { %192 = vperm.xlu0 %1808, %v145_v27  }
 0x2ff   :  { %v189_v30 = vpop.permute.xlu1 %188 }
 0x300   :  { %1635 = vmatpush.xpose.msk.msra.mxu2 %vm209_vm11, %v189_v30 }
 0x303   :  { %1636 = vmatmul.msk.f32.vlgmr.msra.gmra.mxu2 %vm209_vm11, %v185_v31 }
 0x307   :  { %v237_v1 = vpop.permute.xlu0 %236  ;;  %v299_v33 = vpop.permute.xlu1 %298 }
 0x308   :  { %1637 = vmatpush.xpose.msk.msra.mxu3 %vm209_vm11, %v237_v1  ;;  %319 = vmatpush.msrb.mxu2 %v299_v33  ;;  %v1654_v1 = vld [vmem:[%s2415_s2 + $0x4] sm:$0xf]  ;;  %v1777_v33 = vld [vmem:[%s2415_s2 + $0xc] sm:$0xf0] }
 0x30b   :  { %1638 = vmatmul.msk.f32.vlgmr.msra.gmra.mxu3 %vm209_vm11, %v186_v6 }
 0x30f   :  { %v193_v34 = vpop.permute.xlu0 %192 }
 0x310   :  { %v2054_v35 = vperm.slane %v193_v34, %v1985_v11  ;;  %v1655_v34 = vor.u32 %v1777_v33, %v1654_v1  ;;  %v1825_v33 = vld [vmem:[%s2414_s4 + $0x2] ss:$0 sm:$0xff] }
 0x386   :  { %v232_v36 = vpop.f32.mrf.mxu2 }
 0x387   :  { %v233_v37 = vadd.f32 %v232_v36, %v2054_v35 }
 0x389   :  { %v276_v39 = vsel %vm275_vm12, %v233_v37, -inf }
 0x38a   :  { %277 = vmax.xlane.f32.xlu2 %v276_v39 }
 0x38e   :  { %v272_v41 = vpop.f32.mrf.mxu3 }
 0x38f   :  { %v273_v42 = vadd.f32 %v272_v41, %v2059_v40 }
 0x391   :  { %v279_v43 = vsel %vm275_vm12, %v273_v42, -inf }
 0x392   :  { %280 = vmax.xlane.f32.xlu0 %v279_v43 }
 0x3a6   :  { %324 = vrot.lane.b32.xlu0 %v2039_v22, %s1915_s30 }
 0x3ae   :  { %381 = vrot.lane.b32.xlu0 %v186_v6, %s1917_s6 }
 0x3b6   :  { %353 = vrot.lane.b32.xlu0 %v185_v31, %s1917_s6 }
 0x3fd   :  { %v278_v44 = vpop.xlane.xlu2 %277 }
 0x3fe   :  { %v282_v45 = vsub.f32 %v233_v37, %v278_v44  ;;  %v1649_v37 = vld [vmem:[%s2415_s2 + $0x1c] sm:$0xf] }
 0x3ff   :  { %v1650_v39 = vor.u32 %v1778_v38, %v1649_v37  ;;  %v1826_v37 = vld [vmem:[%s2414_s4 + $0x3] ss:$0 sm:$0xff] }
 0x400   :  { %v284_v46 = vmul.f32 1.442695, %v282_v45  ;;  %v1824_v45 = vld [vmem:[%s2414_s4 + $0x1] ss:$0 sm:$0xff] }
 0x402   :  { %1847 = vpow2.f32 %v284_v46 }
 0x405   :  { %v281_v47 = vpop.xlane.xlu0 %280 }
 0x406   :  { %v283_v48 = vsub.f32 %v273_v42, %v281_v47 }
 0x408   :  { %v1848_v49 = vpop.eup %1847  ;;  %v286_v50 = vmul.f32 1.442695, %v283_v48 }
 0x409   :  { %v288_v51 = vsel %vm275_vm12, %v1848_v49, 0.0 }
 0x40a   :  { %1849 = vpow2.f32 %v286_v50  ;;  %289 = vadd.xlane.f32.xlu2 %v288_v51 }
 0x410   :  { %v1850_v52 = vpop.eup %1849 }
 0x411   :  { %v291_v53 = vsel %vm275_vm12, %v1850_v52, 0.0 }
 0x412   :  { %292 = vadd.xlane.f32.xlu1 %v291_v53 }
 0x418   :  { %v325_v54 = vpop.permute.xlu0 %324 }
 0x419   :  { %345 = vmatpush.msrb.mxu3 %v325_v54 }
 0x420   :  { %v382_v62 = vpop.permute.xlu0 %381 }
 0x422   :  { %383 = vrot.lane.b32.xlu2 %v2039_v22, %s1918_s7 }
 0x428   :  { %v354_v0 = vpop.permute.xlu0 %353 }
 0x42b   :  { %355 = vrot.lane.b32.xlu1 %v2035_v20, %s1918_s7 }
 0x47d   :  { %v290_v55 = vpop.xlane.xlu2 %289 }
 0x47e   :  { %1851 = vrcp.f32 %v290_v55 }
 0x484   :  { %v1852_v56 = vpop.eup %1851 }
 0x485   :  { %v384_v57 = vpop.permute.xlu2 %383  ;;  %v293_v58 = vpop.xlane.xlu1 %292  ;;  %v296_v59 = vmul.f32 %v1852_v56, %v1848_v49 }
 0x486   :  { %1853 = vrcp.f32 %v293_v58  ;;  %1643 = vmatpush.xpose.msk.msra.mxu3 %vm209_vm11, %v384_v57 }
 0x487   :  { %1639 = vmatmul.msk.f32.vlgmr.msrb.gmra.mxu2 %vm275_vm12, %v296_v59 }
 0x48c   :  { %v1854_v60 = vpop.eup %1853 }
 0x48d   :  { %v297_v61 = vmul.f32 %v1854_v60, %v1850_v52 }
 0x48f   :  { %1640 = vmatmul.msk.f32.vlgmr.msrb.gmra.mxu3 %vm275_vm12, %v297_v61 }
 0x490   :  { %502 = vmatpush.bf16.msrb.mxu3 %v1650_v39 }
 0x497   :  { %1644 = vmatmul.msk.f32.vlgmr.msra.gmra.mxu3 %vm209_vm11, %v382_v62 }
 0x49d   :  { %v356_v63 = vpop.permute.xlu1 %355 }
 0x49e   :  { %1641 = vmatpush.xpose.msk.msra.mxu2 %vm209_vm11, %v356_v63 }
 0x4a1   :  { %1642 = vmatmul.msk.f32.vlgmr.msra.gmra.mxu2 %vm209_vm11, %v354_v0 }
 0x50a   :  { %v321_v2 = vpop.f32.mrf.mxu2 }
 0x512   :  { %v347_v3 = vpop.f32.mrf.mxu3 }
 0x513   :  { %v350_v4 = vpack.c.bf16 %v347_v3, %v321_v2  ;;  %v1780_v3 = vld [vmem:[%s2415_s2 + $0x28] sm:$0xf0] }
 0x51a   :  { %v406_v5 = vpop.f32.mrf.mxu3 }
 0x51b   :  { %v407_v7 = vadd.f32 %v406_v5, %v2059_v40  ;;  %v1659_v5 = vld [vmem:[%s2415_s2 + $0x8] sm:$0xf] }
 0x51d   :  { %v412_v8 = vsel %vm275_vm12, %v407_v7, -inf }
 0x51e   :  { %413 = vmax.xlane.f32.xlu2 %v412_v8 }
 0x524   :  { %v378_v9 = vpop.f32.mrf.mxu2 }
 0x525   :  { %v379_v10 = vadd.f32 %v378_v9, %v2054_v35 }
 0x527   :  { %v409_v12 = vsel %vm275_vm12, %v379_v10, -inf }
 0x528   :  { %410 = vmax.xlane.f32.xlu1 %v409_v12 }
 0x541   :  { %457 = vrot.lane.b32.xlu1 %v2039_v22, %s1919_s8 }
 0x591   :  { %v414_v14 = vpop.xlane.xlu2 %413 }
 0x592   :  { %v416_v17 = vsub.f32 %v407_v7, %v414_v14  ;;  %v1779_v7 = vld [vmem:[%s2415_s2 + $0x10] sm:$0xf0] }
 0x593   :  { %v1660_v9 = vor.u32 %v1779_v7, %v1659_v5  ;;  %v1783_v5 = vld [vmem:[%s2416_s3 + $0x10] sm:$0xff] }
 0x594   :  { %v419_v18 = vmul.f32 1.442695, %v416_v17 }
 0x596   :  { %1855 = vpow2.f32 %v419_v18 }
 0x59b   :  { %v411_v19 = vpop.xlane.xlu1 %410 }
 0x59c   :  { %v1856_v21 = vpop.eup %1855  ;;  %v415_v23 = vsub.f32 %v379_v10, %v411_v19 }
 0x59d   :  { %v424_v24 = vsel %vm275_vm12, %v1856_v21, 0.0 }
 0x59e   :  { %v417_v25 = vmul.f32 1.442695, %v415_v23  ;;  %425 = vadd.xlane.f32.xlu0 %v424_v24 }
 0x5a0   :  { %1857 = vpow2.f32 %v417_v25 }
 0x5a6   :  { %v1858_v26 = vpop.eup %1857 }
 0x5a7   :  { %v421_v27 = vsel %vm275_vm12, %v1858_v26, 0.0 }
 0x5a8   :  { %422 = vadd.xlane.f32.xlu2 %v421_v27 }
 0x5b2   :  { %431 = vrot.lane.b32.xlu0 %v2035_v20, %s1919_s8 }
 0x5b3   :  { %v458_v22 = vpop.permute.xlu1 %457 }
 0x5b4   :  { %478 = vmatpush.msrb.mxu2 %v458_v22 }
 0x611   :  { %v426_v28 = vpop.xlane.xlu0 %425 }
 0x612   :  { %1859 = vrcp.f32 %v426_v28 }
 0x618   :  { %v1860_v29 = vpop.eup %1859 }
 0x619   :  { %v430_v30 = vmul.f32 %v1860_v29, %v1856_v21 }
 0x61b   :  { %v423_v31 = vpop.xlane.xlu2 %422  ;;  %1646 = vmatmul.msk.f32.vlgmr.msrb.gmra.mxu2 %vm275_vm12, %v430_v30 }
 0x61c   :  { %1861 = vrcp.f32 %v423_v31 }
 0x622   :  { %v1862_v6 = vpop.eup %1861 }
 0x623   :  { %v429_v20 = vmul.f32 %v1862_v6, %v1858_v26 }
 0x624   :  { %v432_v36 = vpop.permute.xlu0 %431 }
 0x625   :  { %452 = vmatpush.msrb.mxu0 %v432_v36 }
 0x626   :  { %1645 = vmatmul.msk.f32.vlgmr.msrb.gmra.mxu0 %vm275_vm12, %v429_v20 }
 0x627   :  { %525 = vmatpush.bf16.msra.mxu0 %v1655_v34 }
 0x62e   :  { %1656 = vmatmul.msk.bf16.vlgmr.msra.gmra.mxu0 %vm209_vm11, %v350_v4 }
 0x69e   :  { %v480_v41 = vpop.f32.mrf.mxu2 }
 0x6a3   :  { %v454_v42 = vpop.f32.mrf.mxu0 }
 0x6a4   :  { %v483_v43 = vpack.c.bf16 %v480_v41, %v454_v42 }
 0x6a6   :  { %1651 = vmatmul.msk.bf16.vlgmr.msrb.gmra.mxu3 %vm209_vm11, %v483_v43  ;;  %v1827_v43 = vld [vmem:[%s2414_s4 + $0x4] ss:$0 sm:$0xff] }
 0x6ab   :  { %v527_v44 = vpop.f32.mrf.mxu0 }
 0x6b3   :  { %v529_v51 = vpop.f32.mrf.mxu0 }
 0x729   :  { %v504_v46 = vpop.f32.mrf.mxu3 }
 0x72a   :  { %v528_v47 = vadd.f32 %v527_v44, %v504_v46 }
 0x72c   :  { %v536_v48 = vadd.f32 %v1824_v45, %v528_v47 }
 0x72e   :  { %v538_v49 = vadd.f32 %v536_v48, %v2025_v15 }
 0x730   :  { %v542_v50 = vsel %vm85_vm3, %v538_v49, 0.0 }
 0x731   :  { %543 = vadd.xlane.f32.xlu2 %v542_v50  ;;  %v506_v52 = vpop.f32.mrf.mxu3 }
 0x732   :  { %v530_v53 = vadd.f32 %v529_v51, %v506_v52 }
 0x734   :  { %v537_v54 = vadd.f32 %v1824_v45, %v530_v53 }
 0x736   :  { %v539_v55 = vadd.f32 %v537_v54, %v2027_v16  ;;  %v1663_v16 = vld [vmem:[%s2415_s2 + $0x20] sm:$0xf] }
 0x737   :  { %v1664_v4 = vor.u32 %v1780_v3, %v1663_v16 }
 0x738   :  { %v545_v56 = vsel %vm85_vm3, %v539_v55, 0.0 }
 0x739   :  { %546 = vadd.xlane.f32.xlu2 %v545_v56  ;;  %626 = vmatpush.bf16.msrb.mxu1 %v1664_v4 }
 0x73d   :  { %627 = vmatpush.bf16.msrb.mxu1 %v1660_v9 }
 0x7a4   :  { %v544_v57 = vpop.xlane.xlu2 %543 }
 0x7a5   :  { %v548_v58 = vmul.f32 %v544_v57, %v1999_v32 }
 0x7a7   :  { %v550_v59 = vsub.f32 %v538_v49, %v548_v58 }
 0x7a9   :  { %v552_v60 = vmul.f32 %v550_v59, %v550_v59 }
 0x7ab   :  { %v554_v61 = vsel %vm85_vm3, %v552_v60, 0.0 }
 0x7ac   :  { %555 = vadd.xlane.f32.xlu2 %v554_v61  ;;  %v547_v15 = vpop.xlane.xlu2 %546 }
 0x7ad   :  { %v549_v62 = vmul.f32 %v547_v15, %v1999_v32  ;;  %v1784_v15 = vld [vmem:[%s2416_s3 + $0x18] sm:$0xff] }
 0x7ae   :  { %767 = vmatpush.bf16.msra.mxu2 %v1784_v15 }
 0x7af   :  { %v551_v63 = vsub.f32 %v539_v55, %v549_v62 }
 0x7b1   :  { %v553_v0 = vmul.f32 %v551_v63, %v551_v63 }
 0x7b2   :  { %768 = vmatpush.bf16.msra.mxu2 %v1783_v5 }
 0x7b3   :  { %v557_v2 = vsel %vm85_vm3, %v553_v0, 0.0 }
 0x7b4   :  { %558 = vadd.xlane.f32.xlu0 %v557_v2 }
 0x81f   :  { %v556_v8 = vpop.xlane.xlu2 %555 }
 0x820   :  { %v560_v10 = vmul.f32 %v556_v8, %v1999_v32 }
 0x822   :  { %v562_v12 = vadd.f32 1e-12, %v560_v10 }
 0x824   :  { %1863 = vrsqrt.f32 %v562_v12  ;;  %vm570_vm14 = vweird.f32 %v562_v12 }
 0x827   :  { %v559_v14 = vpop.xlane.xlu0 %558 }
 0x828   :  { %v561_v17 = vmul.f32 %v559_v14, %v1999_v32 }
 0x82a   :  { %v1864_v18 = vpop.eup %1863  ;;  %v563_v19 = vadd.f32 1e-12, %v561_v17 }
 0x82b   :  { %v565_v21 = vmul.f32 %v1864_v18, %v562_v12  ;;  %vm571_vm13 = vweird.f32 %v1864_v18 }
 0x82c   :  { %1865 = vrsqrt.f32 %v563_v19  ;;  %vm572_vm15 = vmor %vm570_vm14, %vm571_vm13  ;;  %vm580_vm1 = vweird.f32 %v563_v19  ;;  %vm759_vm14 = vcmask 523264  }
 0x82d   :  { %v566_v23 = vmul.f32 %v1864_v18, %v565_v21 }
 0x82f   :  { %v567_v24 = vmul.f32 0.5, %v566_v23 }
 0x831   :  { %v568_v25 = vsub.f32 1.5, %v567_v24 }
 0x832   :  { %v1866_v26 = vpop.eup %1865 }
 0x833   :  { %v569_v27 = vmul.f32 %v1864_v18, %v568_v25  ;;  %v575_v22 = vmul.f32 %v1866_v26, %v563_v19  ;;  %vm581_vm0 = vweird.f32 %v1866_v26 }
 0x834   :  { %vm582_vm2 = vmor %vm580_vm1, %vm581_vm0 }
 0x835   :  { %v576_v28 = vmul.f32 %v1866_v26, %v575_v22  ;;  %v573_v29 = vsel %vm572_vm15, %v1864_v18, %v569_v27  ;;  %v1782_v18 = vld [vmem:[%s2416_s3 + $0x8] sm:$0xff] }
 0x836   :  { %v584_v1 = vmul.f32 %v573_v29, %v550_v59  ;;  %769 = vmatpush.bf16.msra.mxu2 %v1782_v18 }
 0x837   :  { %v577_v30 = vmul.f32 0.5, %v576_v28 }
 0x838   :  { %v589_v36 = vmul.f32 %v1825_v33, %v584_v1 }
 0x839   :  { %v578_v31 = vsub.f32 1.5, %v577_v30 }
 0x83a   :  { %v2136_v39 = vadd.f32 %v1826_v37, %v589_v36 }
 0x83b   :  { %v579_v6 = vmul.f32 %v1866_v26, %v578_v31 }
 0x83d   :  { %v583_v20 = vsel %vm582_vm2, %v1866_v26, %v579_v6  ;;  %v1781_v26 = vld [vmem:[%s2416_s3] sm:$0xff] }
 0x83e   :  { %v585_v34 = vmul.f32 %v583_v20, %v551_v63  ;;  %770 = vmatpush.bf16.msra.mxu2 %v1781_v26 }
 0x840   :  { %v590_v38 = vmul.f32 %v1825_v33, %v585_v34 }
 0x842   :  { %v2138_v41 = vadd.f32 %v1826_v37, %v590_v38 }
 0x844   :  { %v596_v42 = vpack.c.bf16 %v2138_v41, %v2136_v39 }
 0x846   :  { %1665 = vmatmul.msk.bf16.vlgmr.msrb.gmra.mxu1 %vm85_vm3, %v596_v42 }
 0x8c3   :  { %v629_v44 = vpop.f32.mrf.mxu1 }
 0x8c4   :  { %v2146_v45 = vadd.f32 %v1827_v43, %v629_v44 }
 0x8c6   :  { %v2149_v46 = vmul.f32 0.70710677, %v2146_v45 }
 0x8c8   :  { %v638_v47 = vmul.f32 %v2149_v46, %v2149_v46 }
 0x8ca   :  { %v639_v48 = vmin.f32 %v638_v47, 16.0 }
 0x8cb   :  { %v631_v49 = vpop.f32.mrf.mxu1 }
 0x8cc   :  { %v640_v50 = vmul.f32 2.1237322e-06, %v639_v48  ;;  %v651_v51 = vmul.f32 3.8918573e-05, %v639_v48  ;;  %v2153_v52 = vadd.f32 %v1827_v43, %v631_v49 }
 0x8ce   :  { %v641_v53 = vadd.f32 0.00028619796, %v640_v50  ;;  %v652_v54 = vadd.f32 0.001143296, %v651_v51  ;;  %v2156_v55 = vmul.f32 0.70710677, %v2153_v52 }
 0x8d0   :  { %v653_v56 = vmul.f32 %v652_v54, %v639_v48  ;;  %v678_v57 = vmul.f32 %v2156_v55, %v2156_v55  ;;  %v642_v58 = vmul.f32 %v641_v53, %v639_v48 }
 0x8d2   :  { %v654_v59 = vadd.f32 0.014752088, %v653_v56  ;;  %v679_v60 = vmin.f32 %v678_v57, 16.0  ;;  %v643_v0 = vadd.f32 0.0036580483, %v642_v58 }
 0x8d4   :  { %v655_v61 = vmul.f32 %v654_v59, %v639_v48  ;;  %v680_v62 = vmul.f32 2.1237322e-06, %v679_v60  ;;  %v691_v63 = vmul.f32 3.8918573e-05, %v679_v60  ;;  %v644_v9 = vmul.f32 %v643_v0, %v639_v48 }
 0x8d6   :  { %v656_v2 = vadd.f32 0.112945676, %v655_v61  ;;  %v681_v16 = vadd.f32 0.00028619796, %v680_v62  ;;  %v692_v3 = vadd.f32 0.001143296, %v691_v63 }
 0x8d7   :  { %v645_v21 = vadd.f32 0.05243302, %v644_v9 }
 0x8d8   :  { %v657_v4 = vmul.f32 %v656_v2, %v639_v48  ;;  %v682_v7 = vmul.f32 %v681_v16, %v679_v60  ;;  %v693_v8 = vmul.f32 %v692_v3, %v679_v60 }
 0x8d9   :  { %v646_v22 = vmul.f32 %v645_v21, %v639_v48 }
 0x8da   :  { %v658_v10 = vadd.f32 0.4994258, %v657_v4  ;;  %v683_v12 = vadd.f32 0.0036580483, %v682_v7  ;;  %v694_v14 = vadd.f32 0.014752088, %v693_v8 }
 0x8db   :  { %v647_v1 = vadd.f32 0.18741608, %v646_v22  ;;  %v634_v7 = vmul.f32 0.5, %v2146_v45  ;;  %v635_v8 = vmul.f32 0.5, %v2153_v52 }
 0x8dc   :  { %v659_v17 = vmul.f32 %v658_v10, %v639_v48  ;;  %v695_v19 = vmul.f32 %v694_v14, %v679_v60  ;;  %v684_v24 = vmul.f32 %v683_v12, %v679_v60 }
 0x8dd   :  { %v648_v36 = vmul.f32 %v647_v1, %v639_v48 }
 0x8de   :  { %v660_v23 = vadd.f32 1.0, %v659_v17  ;;  %v696_v25 = vadd.f32 0.112945676, %v695_v19  ;;  %v685_v28 = vadd.f32 0.05243302, %v684_v24 }
 0x8df   :  { %v649_v47 = vadd.f32 1.1283791, %v648_v36  ;;  %v1692_v36 = vld [vmem:[%s2415_s2 + $0x30] sm:$0xf] }
 0x8e0   :  { %1867 = vrcp.f32 %v660_v23  ;;  %v697_v27 = vmul.f32 %v696_v25, %v679_v60  ;;  %v686_v6 = vmul.f32 %v685_v28, %v679_v60  ;;  %v672_v38 = vand.u32 2147483648, %v660_v23 }
 0x8e1   :  { %v670_v43 = vand.u32 2147483647, %v660_v23  ;;  %vm666_vm5 = vweird.f32 %v660_v23  ;;  %v650_v57 = vmul.f32 %v649_v47, %v2149_v46 }
 0x8e2   :  { %v698_v29 = vadd.f32 0.4994258, %v697_v27  ;;  %v687_v42 = vadd.f32 0.18741608, %v686_v6  ;;  %v673_v51 = vor.u32 1.1754944e-38, %v672_v38 }
 0x8e3   :  { %vm671_vm7 = vcmp.eq.f32.partialorder %v670_v43, 8.507059e+37 }
 0x8e4   :  { %v699_v30 = vmul.f32 %v698_v29, %v679_v60  ;;  %v688_v53 = vmul.f32 %v687_v42, %v679_v60 }
 0x8e6   :  { %v1868_v31 = vpop.eup %1867  ;;  %v700_v20 = vadd.f32 1.0, %v699_v30  ;;  %v689_v48 = vadd.f32 1.1283791, %v688_v53 }
 0x8e7   :  { %v662_v33 = vmul.f32 %v1868_v31, %v660_v23  ;;  %vm667_vm4 = vweird.f32 %v1868_v31 }
 0x8e8   :  { %1869 = vrcp.f32 %v700_v20  ;;  %vm668_vm6 = vmor %vm666_vm5, %vm667_vm4  ;;  %v712_v59 = vand.u32 2147483648, %v700_v20  ;;  %v710_v62 = vand.u32 2147483647, %v700_v20  ;;  %vm706_vm9 = vweird.f32 %v700_v20 }
 0x8e9   :  { %v663_v34 = vsub.f32 1.0, %v662_v33  ;;  %v690_v16 = vmul.f32 %v689_v48, %v2156_v55  ;;  %v1828_v55 = vld [vmem:[%s2414_s4 + $0x5] ss:$0 sm:$0xff]  ;;  %v1786_v33 = vld [vmem:[%s2415_s2 + $0x50] sm:$0xf0] }
 0x8ea   :  { %v713_v0 = vor.u32 1.1754944e-38, %v712_v59  ;;  %vm711_vm13 = vcmp.eq.f32.partialorder %v710_v62, 8.507059e+37  ;;  %v1829_v62 = vld [vmem:[%s2414_s4 + $0x6] ss:$0 sm:$0xff] }
 0x8eb   :  { %v664_v37 = vmul.f32 %v1868_v31, %v663_v34 }
 0x8ed   :  { %v665_v44 = vadd.f32 %v1868_v31, %v664_v37  ;;  %v1785_v37 = vld [vmem:[%s2415_s2 + $0x38] sm:$0xf0] }
 0x8ee   :  { %v1870_v49 = vpop.eup %1869  ;;  %v1693_v42 = vor.u32 %v1785_v37, %v1692_v36 }
 0x8ef   :  { %v669_v50 = vsel %vm668_vm6, %v1868_v31, %v665_v44  ;;  %v702_v54 = vmul.f32 %v1870_v49, %v700_v20  ;;  %vm707_vm8 = vweird.f32 %v1870_v49 }
 0x8f0   :  { %v674_v56 = vsel %vm671_vm7, %v673_v51, %v669_v50  ;;  %vm708_vm10 = vmor %vm706_vm9, %vm707_vm8 }
 0x8f1   :  { %v703_v58 = vsub.f32 1.0, %v702_v54  ;;  %v675_v61 = vmul.f32 %v674_v56, %v650_v57 }
 0x8f3   :  { %v704_v15 = vmul.f32 %v1870_v49, %v703_v58  ;;  %v1666_v2 = vclamps-f32 %v675_v61, 1.0 }
 0x8f5   :  { %v705_v63 = vadd.f32 %v1870_v49, %v704_v15  ;;  %v718_v5 = vadd.f32 1.0, %v1666_v2 }
 0x8f7   :  { %v709_v60 = vsel %vm708_vm10, %v1870_v49, %v705_v63  ;;  %v720_v10 = vmul.f32 %v718_v5, %v634_v7 }
 0x8f8   :  { %v714_v3 = vsel %vm711_vm13, %v713_v0, %v709_v60 }
 0x8f9   :  { %v715_v4 = vmul.f32 %v714_v3, %v690_v16  ;;  %v1830_v16 = vld [vmem:[%s2414_s4 + $0x7] ss:$0 sm:$0xff] }
 0x8fb   :  { %v1667_v46 = vclamps-f32 %v715_v4, 1.0 }
 0x8fd   :  { %v719_v9 = vadd.f32 1.0, %v1667_v46 }
 0x8ff   :  { %v721_v12 = vmul.f32 %v719_v9, %v635_v8  ;;  %v1831_v8 = vld [vmem:[%s2414_s4 + $0x8] ss:$0 sm:$0xff] }
 0x901   :  { %v722_v14 = vpack.c.bf16 %v721_v12, %v720_v10 }
 0x903   :  { %1684 = vmatmul.msk.bf16.vlgmr.msra.gmra.mxu2 %vm759_vm14, %v722_v14 }
 0x986   :  { %v772_v17 = vpop.f32.mrf.mxu2 }
 0x987   :  { %v773_v18 = vadd.f32 %v1828_v55, %v772_v17 }
 0x989   :  { %v777_v19 = vadd.f32 %v773_v18, %v2136_v39 }
 0x98b   :  { %v781_v21 = vsel %vm85_vm3, %v777_v19, 0.0 }
 0x98c   :  { %782 = vadd.xlane.f32.xlu1 %v781_v21 }
 0x98e   :  { %v774_v45 = vpop.f32.mrf.mxu2 }
 0x98f   :  { %v775_v52 = vadd.f32 %v1828_v55, %v774_v45 }
 0x991   :  { %v778_v23 = vadd.f32 %v775_v52, %v2138_v41  ;;  %v1696_v41 = vld [vmem:[%s2415_s2 + $0x48] sm:$0xf] }
 0x992   :  { %v1697_v6 = vor.u32 %v1786_v33, %v1696_v41 }
 0x993   :  { %v784_v24 = vsel %vm85_vm3, %v778_v23, 0.0 }
 0x994   :  { %785 = vadd.xlane.f32.xlu2 %v784_v24  ;;  %867 = vmatpush.bf16.msra.mxu3 %v1697_v6 }
 0x998   :  { %868 = vmatpush.bf16.msra.mxu3 %v1693_v42 }
 0x9ff   :  { %v783_v25 = vpop.xlane.xlu1 %782 }
 0xa00   :  { %v787_v26 = vmul.f32 %v783_v25, %v1999_v32 }
 0xa02   :  { %v789_v27 = vsub.f32 %v777_v19, %v787_v26 }
 0xa04   :  { %v791_v22 = vmul.f32 %v789_v27, %v789_v27 }
 0xa06   :  { %v793_v28 = vsel %vm85_vm3, %v791_v22, 0.0 }
 0xa07   :  { %v786_v29 = vpop.xlane.xlu2 %785  ;;  %794 = vadd.xlane.f32.xlu2 %v793_v28 }
 0xa08   :  { %v788_v39 = vmul.f32 %v786_v29, %v1999_v32 }
 0xa0a   :  { %v790_v30 = vsub.f32 %v778_v23, %v788_v39 }
 0xa0c   :  { %v792_v31 = vmul.f32 %v790_v30, %v790_v30 }
 0xa0e   :  { %v796_v1 = vsel %vm85_vm3, %v792_v31, 0.0 }
 0xa0f   :  { %797 = vadd.xlane.f32.xlu2 %v796_v1 }
 0xa7a   :  { %v795_v20 = vpop.xlane.xlu2 %794 }
 0xa7b   :  { %v799_v34 = vmul.f32 %v795_v20, %v1999_v32 }
 0xa7d   :  { %v801_v38 = vadd.f32 1e-12, %v799_v34 }
 0xa7f   :  { %1871 = vrsqrt.f32 %v801_v38  ;;  %vm809_vm0 = vweird.f32 %v801_v38 }
 0xa82   :  { %v798_v43 = vpop.xlane.xlu2 %797 }
 0xa83   :  { %v800_v44 = vmul.f32 %v798_v43, %v1999_v32 }
 0xa85   :  { %v1872_v47 = vpop.eup %1871  ;;  %v802_v49 = vadd.f32 1e-12, %v800_v44 }
 0xa86   :  { %v804_v50 = vmul.f32 %v1872_v47, %v801_v38  ;;  %vm810_vm15 = vweird.f32 %v1872_v47 }
 0xa87   :  { %1873 = vrsqrt.f32 %v802_v49  ;;  %vm811_vm1 = vmor %vm809_vm0, %vm810_vm15  ;;  %vm819_vm4 = vweird.f32 %v802_v49 }
 0xa88   :  { %v805_v51 = vmul.f32 %v1872_v47, %v804_v50 }
 0xa8a   :  { %v806_v53 = vmul.f32 0.5, %v805_v51 }
 0xa8c   :  { %v807_v54 = vsub.f32 1.5, %v806_v53 }
 0xa8d   :  { %v1874_v56 = vpop.eup %1873 }
 0xa8e   :  { %v808_v57 = vmul.f32 %v1872_v47, %v807_v54  ;;  %v814_v58 = vmul.f32 %v1874_v56, %v802_v49  ;;  %vm820_vm2 = vweird.f32 %v1874_v56 }
 0xa8f   :  { %vm821_vm5 = vmor %vm819_vm4, %vm820_vm2 }
 0xa90   :  { %v815_v48 = vmul.f32 %v1874_v56, %v814_v58  ;;  %v812_v59 = vsel %vm811_vm1, %v1872_v47, %v808_v57 }
 0xa91   :  { %v823_v63 = vmul.f32 %v812_v59, %v789_v27 }
 0xa92   :  { %v816_v61 = vmul.f32 0.5, %v815_v48 }
 0xa93   :  { %v828_v60 = vmul.f32 %v1829_v62, %v823_v63 }
 0xa94   :  { %v817_v15 = vsub.f32 1.5, %v816_v61 }
 0xa95   :  { %v2208_v5 = vadd.f32 %v1830_v16, %v828_v60 }
 0xa96   :  { %v818_v0 = vmul.f32 %v1874_v56, %v817_v15 }
 0xa98   :  { %v822_v2 = vsel %vm821_vm5, %v1874_v56, %v818_v0 }
 0xa99   :  { %v824_v3 = vmul.f32 %v822_v2, %v790_v30 }
 0xa9b   :  { %v829_v4 = vmul.f32 %v1829_v62, %v824_v3 }
 0xa9d   :  { %v2210_v46 = vadd.f32 %v1830_v16, %v829_v4 }
 0xa9f   :  { %v835_v7 = vpack.c.bf16 %v2210_v46, %v2208_v5 }
 0xaa1   :  { %1698 = vmatmul.msk.bf16.vlgmr.msra.gmra.mxu3 %vm85_vm3, %v835_v7 }
 0xb24   :  { %v870_v9 = vpop.f32.mrf.mxu3 }
 0xb25   :  { %v871_v10 = vadd.f32 %v1831_v8, %v870_v9 }
 0xb27   :  { %1012 = vrot.lane.b32.xlu1 %v871_v10, %s1918_s7  ;;  %878 = vrot.lane.b32.xlu2 %v871_v10, %s1914_s29  ;;  %v875_v18 = vmul.f32 0.25, %v871_v10 }
 0xb2c   :  { %v872_v12 = vpop.f32.mrf.mxu3 }
 0xb2d   :  { %v873_v14 = vadd.f32 %v1831_v8, %v872_v12 }
 0xb2f   :  { %906 = vrot.lane.b32.xlu0 %v873_v14, %s1914_s29  ;;  %1040 = vrot.lane.b32.xlu2 %v873_v14, %s1918_s7  ;;  %v2222_v55 = vpack.i.bf16 %v873_v14, %v871_v10  ;;  %v876_v17 = vmul.f32 0.25, %v873_v14 }
 0xb37   :  { %1038 = vrot.lane.b32.xlu2 %v876_v17, %s1917_s6  ;;  %1010 = vrot.lane.b32.xlu0 %v875_v18, %s1917_s6 }
 0xb81   :  { %v879_v19 = vpop.permute.xlu2 %878 }
 0xb82   :  { %1699 = vmatpush.xpose.msk.msrb.mxu0 %vm209_vm11, %v879_v19  ;;  %v1717_v19 = vld [vmem:[%s2415_s2 + $0x4c] sm:$0xf] }
 0xb85   :  { %1700 = vmatmul.msk.f32.vlgmr.msrb.gmra.mxu0 %vm209_vm11, %v875_v18 }
 0xb89   :  { %v1041_v21 = vpop.permute.xlu2 %1040 }
 0xb8a   :  { %1709 = vmatpush.xpose.msk.msrb.mxu3 %vm209_vm11, %v1041_v21  ;;  %v1788_v21 = vld [vmem:[%s2415_s2 + $0x54] sm:$0xf0] }
 0xb91   :  { %v1039_v45 = vpop.permute.xlu2 %1038 }
 0xb92   :  { %1710 = vmatmul.msk.f32.vlgmr.msrb.gmra.mxu3 %vm209_vm11, %v1039_v45  ;;  %v1718_v45 = vor.u32 %v1788_v21, %v1717_v19 }
 0xb99   :  { %v1013_v52 = vpop.permute.xlu1 %1012 }
 0xb9a   :  { %1707 = vmatpush.xpose.msk.msrb.mxu2 %vm209_vm11, %v1013_v52 }
 0xb9e   :  { %1159 = vmatpush.bf16.msra.mxu2 %v1718_v45 }
 0xba1   :  { %v907_v23 = vpop.permute.xlu0 %906 }
 0xba2   :  { %1701 = vmatpush.xpose.msk.msra.mxu1 %vm209_vm11, %v907_v23 }
 0xba5   :  { %1702 = vmatmul.msk.f32.vlgmr.msra.gmra.mxu1 %vm209_vm11, %v876_v17  ;;  %v1787_v17 = vld [vmem:[%s2415_s2 + $0x3c] sm:$0xf0] }
 0xba9   :  { %v1011_v24 = vpop.permute.xlu0 %1010 }
 0xbaa   :  { %1708 = vmatmul.msk.f32.vlgmr.msrb.gmra.mxu2 %vm209_vm11, %v1011_v24 }
 0xc02   :  { %v902_v25 = vpop.f32.mrf.mxu0 }
 0xc03   :  { %v903_v26 = vadd.f32 %v902_v25, %v2054_v35 }
 0xc05   :  { %v933_v27 = vsel %vm275_vm12, %v903_v26, -inf }
 0xc06   :  { %934 = vmax.xlane.f32.xlu0 %v933_v27 }
 0xc15   :  { %v1063_v1 = vpop.f32.mrf.mxu3 }
 0xc16   :  { %v1064_v41 = vadd.f32 %v1063_v1, %v2059_v40 }
 0xc18   :  { %v1069_v33 = vsel %vm275_vm12, %v1064_v41, -inf }
 0xc22   :  { %v930_v22 = vpop.f32.mrf.mxu1 }
 0xc23   :  { %v931_v28 = vadd.f32 %v930_v22, %v2059_v40 }
 0xc25   :  { %v936_v29 = vsel %vm275_vm12, %v931_v28, -inf }
 0xc26   :  { %937 = vmax.xlane.f32.xlu1 %v936_v29 }
 0xc2d   :  { %v1035_v39 = vpop.f32.mrf.mxu2 }
 0xc2e   :  { %v1036_v30 = vadd.f32 %v1035_v39, %v2054_v35 }
 0xc30   :  { %v1066_v31 = vsel %vm275_vm12, %v1036_v30, -inf }
 0xc31   :  { %1067 = vmax.xlane.f32.xlu2 %v1066_v31 }
 0xc39   :  { %1070 = vmax.xlane.f32.xlu2 %v1069_v33 }
 0xc79   :  { %v935_v6 = vpop.xlane.xlu0 %934 }
 0xc7a   :  { %v939_v20 = vsub.f32 %v903_v26, %v935_v6 }
 0xc7c   :  { %v941_v34 = vmul.f32 1.442695, %v939_v20 }
 0xc7e   :  { %1875 = vpow2.f32 %v941_v34 }
 0xc84   :  { %v1876_v36 = vpop.eup %1875 }
 0xc85   :  { %v945_v37 = vsel %vm275_vm12, %v1876_v36, 0.0 }
 0xc86   :  { %946 = vadd.xlane.f32.xlu0 %v945_v37 }
 0xc99   :  { %v938_v38 = vpop.xlane.xlu1 %937 }
 0xc9a   :  { %v940_v42 = vsub.f32 %v931_v28, %v938_v38  ;;  %v1832_v28 = vld [vmem:[%s2414_s4 + $0x9] ss:$0 sm:$0xff] }
 0xc9c   :  { %v943_v35 = vmul.f32 1.442695, %v940_v42 }
 0xc9e   :  { %1877 = vpow2.f32 %v943_v35 }
 0xca4   :  { %v1878_v43 = vpop.eup %1877  ;;  %v1068_v44 = vpop.xlane.xlu2 %1067 }
 0xca5   :  { %v1072_v47 = vsub.f32 %v1036_v30, %v1068_v44  ;;  %v948_v40 = vsel %vm275_vm12, %v1878_v43, 0.0 }
 0xca6   :  { %949 = vadd.xlane.f32.xlu1 %v948_v40 }
 0xca7   :  { %v1074_v49 = vmul.f32 1.442695, %v1072_v47 }
 0xca9   :  { %1879 = vpow2.f32 %v1074_v49 }
 0xcac   :  { %v1071_v50 = vpop.xlane.xlu2 %1070 }
 0xcad   :  { %v1073_v51 = vsub.f32 %v1064_v41, %v1071_v50  ;;  %v1790_v50 = vld [vmem:[%s2415_s2 + $0x58] sm:$0xf0] }
 0xcaf   :  { %v1880_v53 = vpop.eup %1879  ;;  %v1076_v54 = vmul.f32 1.442695, %v1073_v51 }
 0xcb0   :  { %v1078_v56 = vsel %vm275_vm12, %v1880_v53, 0.0 }
 0xcb1   :  { %1881 = vpow2.f32 %v1076_v54  ;;  %1079 = vadd.xlane.f32.xlu2 %v1078_v56  ;;  %v1735_v56 = vld [vmem:[%s2415_s2 + $0x38] sm:$0xf] }
 0xcb7   :  { %v1882_v57 = vpop.eup %1881 }
 0xcb8   :  { %v1081_v58 = vsel %vm275_vm12, %v1882_v57, 0.0 }
 0xcb9   :  { %1082 = vadd.xlane.f32.xlu0 %v1081_v58 }
 0xcbf   :  { %1810 = vrot.lane.b32.xlu1 %v2222_v55, %s1915_s30 }
 0xcc9   :  { %1815 = vrot.lane.b32.xlu2 %v2222_v55, %s1919_s8  ;;  %v1722_v55 = vld [vmem:[%s2415_s2 + $0x34] sm:$0xf] }
 0xcca   :  { %v1723_v18 = vor.u32 %v1787_v17, %v1722_v55 }
 0xccc   :  { %1182 = vmatpush.bf16.msra.mxu3 %v1723_v18  ;;  %v1834_v18 = vld [vmem:[%s2414_s4 + $0xb] ss:$0 sm:$0xff] }
 0xcf9   :  { %v947_v48 = vpop.xlane.xlu0 %946 }
 0xcfa   :  { %1883 = vrcp.f32 %v947_v48 }
 0xd00   :  { %v1884_v15 = vpop.eup %1883 }
 0xd01   :  { %v953_v3 = vmul.f32 %v1884_v15, %v1876_v36 }
 0xd19   :  { %v950_v59 = vpop.xlane.xlu1 %949 }
 0xd1a   :  { %1885 = vrcp.f32 %v950_v59 }
 0xd20   :  { %v1886_v63 = vpop.eup %1885 }
 0xd21   :  { %v954_v4 = vmul.f32 %v1886_v63, %v1878_v43 }
 0xd24   :  { %v1080_v61 = vpop.xlane.xlu2 %1079 }
 0xd25   :  { %1887 = vrcp.f32 %v1080_v61 }
 0xd2b   :  { %v1888_v9 = vpop.eup %1887 }
 0xd2c   :  { %v1083_v62 = vpop.xlane.xlu0 %1082  ;;  %v1816_v0 = vpop.permute.xlu2 %1815  ;;  %v1086_v12 = vmul.f32 %v1888_v9, %v1880_v53 }
 0xd2d   :  { %1889 = vrcp.f32 %v1083_v62  ;;  %v1818_v7 = vunpack.i.h.bf16 %v1816_v0  ;;  %v1817_v8 = vunpack.i.l.bf16 %v1816_v0 }
 0xd31   :  { %v1811_v2 = vpop.permute.xlu1 %1810 }
 0xd32   :  { %v1813_v16 = vunpack.i.h.bf16 %v1811_v2  ;;  %v1812_v60 = vunpack.i.l.bf16 %v1811_v2 }
 0xd33   :  { %v1890_v10 = vpop.eup %1889 }
 0xd34   :  { %976 = vmatpush.msra.mxu0 %v1812_v60  ;;  %1002 = vmatpush.msrb.mxu1 %v1813_v16  ;;  %v1087_v14 = vmul.f32 %v1890_v10, %v1882_v57  ;;  %v1789_v57 = vld [vmem:[%s2415_s2 + $0x40] sm:$0xf0] }
 0xd35   :  { %1703 = vmatmul.msk.f32.vlgmr.msra.gmra.mxu0 %vm275_vm12, %v953_v3  ;;  %1704 = vmatmul.msk.f32.vlgmr.msrb.gmra.mxu1 %vm275_vm12, %v954_v4  ;;  %v1736_v48 = vor.u32 %v1789_v57, %v1735_v56 }
 0xd36   :  { %1109 = vmatpush.msrb.mxu0 %v1817_v8  ;;  %1135 = vmatpush.msra.mxu1 %v1818_v7 }
 0xd3d   :  { %1711 = vmatmul.msk.f32.vlgmr.msrb.gmra.mxu0 %vm275_vm12, %v1086_v12  ;;  %1712 = vmatmul.msk.f32.vlgmr.msra.gmra.mxu1 %vm275_vm12, %v1087_v14  ;;  %v1833_v12 = vld [vmem:[%s2414_s4 + $0xa] ss:$0 sm:$0xff] }
 0xdb2   :  { %v978_v52 = vpop.f32.mrf.mxu0  ;;  %v1004_v23 = vpop.f32.mrf.mxu1 }
 0xdb3   :  { %v1007_v24 = vpack.c.bf16 %v1004_v23, %v978_v52 }
 0xdb5   :  { %1724 = vmatmul.msk.bf16.vlgmr.msra.gmra.mxu3 %vm209_vm11, %v1007_v24 }
 0xdba   :  { %v1111_v25 = vpop.f32.mrf.mxu0  ;;  %v1137_v26 = vpop.f32.mrf.mxu1 }
 0xdbb   :  { %v1140_v27 = vpack.c.bf16 %v1137_v26, %v1111_v25  ;;  %v1835_v25 = vld [vmem:[%s2414_s4 + $0xc] ss:$0 sm:$0xff] }
 0xdbd   :  { %1719 = vmatmul.msk.bf16.vlgmr.msra.gmra.mxu2 %vm209_vm11, %v1140_v27 }
 0xe38   :  { %v1184_v22 = vpop.f32.mrf.mxu3 }
 0xe40   :  { %v1161_v29 = vpop.f32.mrf.mxu2  ;;  %v1186_v41 = vpop.f32.mrf.mxu3 }
 0xe41   :  { %v1185_v39 = vadd.f32 %v1184_v22, %v1161_v29 }
 0xe43   :  { %v1193_v30 = vadd.f32 %v1832_v28, %v1185_v39 }
 0xe45   :  { %v1195_v31 = vadd.f32 %v1193_v30, %v2208_v5 }
 0xe47   :  { %v1199_v1 = vsel %vm85_vm3, %v1195_v31, 0.0 }
 0xe48   :  { %1200 = vadd.xlane.f32.xlu0 %v1199_v1  ;;  %v1163_v33 = vpop.f32.mrf.mxu2 }
 0xe49   :  { %v1187_v6 = vadd.f32 %v1186_v41, %v1163_v33 }
 0xe4b   :  { %v1194_v20 = vadd.f32 %v1832_v28, %v1187_v6 }
 0xe4d   :  { %v1196_v34 = vadd.f32 %v1194_v20, %v2210_v46  ;;  %v1739_v46 = vld [vmem:[%s2415_s2 + $0x50] sm:$0xf] }
 0xe4e   :  { %v1740_v51 = vor.u32 %v1790_v50, %v1739_v46  ;;  %v1793_v50 = vld [vmem:[%s2416_s3 + $0x30] sm:$0xff] }
 0xe4f   :  { %v1202_v36 = vsel %vm85_vm3, %v1196_v34, 0.0 }
 0xe50   :  { %1203 = vadd.xlane.f32.xlu0 %v1202_v36  ;;  %1283 = vmatpush.bf16.msra.mxu0 %v1740_v51 }
 0xe54   :  { %1284 = vmatpush.bf16.msra.mxu0 %v1736_v48 }
 0xebb   :  { %v1201_v37 = vpop.xlane.xlu0 %1200 }
 0xebc   :  { %v1205_v38 = vmul.f32 %v1201_v37, %v1999_v32 }
 0xebe   :  { %v1207_v42 = vsub.f32 %v1195_v31, %v1205_v38 }
 0xec0   :  { %v1209_v35 = vmul.f32 %v1207_v42, %v1207_v42 }
 0xec2   :  { %v1211_v43 = vsel %vm85_vm3, %v1209_v35, 0.0  ;;  %v1794_v35 = vld [vmem:[%s2416_s3 + $0x38] sm:$0xff] }
 0xec3   :  { %1212 = vadd.xlane.f32.xlu0 %v1211_v43  ;;  %v1204_v5 = vpop.xlane.xlu0 %1203  ;;  %1424 = vmatpush.bf16.msrb.mxu1 %v1794_v35 }
 0xec4   :  { %v1206_v44 = vmul.f32 %v1204_v5, %v1999_v32 }
 0xec6   :  { %v1208_v47 = vsub.f32 %v1196_v34, %v1206_v44 }
 0xec7   :  { %1425 = vmatpush.bf16.msrb.mxu1 %v1793_v50 }
 0xec8   :  { %v1210_v40 = vmul.f32 %v1208_v47, %v1208_v47 }
 0xeca   :  { %v1214_v49 = vsel %vm85_vm3, %v1210_v40, 0.0 }
 0xecb   :  { %1215 = vadd.xlane.f32.xlu1 %v1214_v49 }
 0xf36   :  { %v1213_v53 = vpop.xlane.xlu0 %1212 }
 0xf37   :  { %v1217_v54 = vmul.f32 %v1213_v53, %v1999_v32 }
 0xf39   :  { %v1219_v58 = vadd.f32 1e-12, %v1217_v54 }
 0xf3b   :  { %1891 = vrsqrt.f32 %v1219_v58  ;;  %vm1227_vm12 = vweird.f32 %v1219_v58 }
 0xf3e   :  { %v1216_v59 = vpop.xlane.xlu1 %1215 }
 0xf3f   :  { %v1218_v61 = vmul.f32 %v1216_v59, %v1999_v32  ;;  %v1792_v59 = vld [vmem:[%s2416_s3 + $0x28] sm:$0xff] }
 0xf40   :  { %1426 = vmatpush.bf16.msrb.mxu1 %v1792_v59 }
 0xf41   :  { %v1892_v15 = vpop.eup %1891  ;;  %v1220_v62 = vadd.f32 1e-12, %v1218_v61 }
 0xf42   :  { %v1222_v63 = vmul.f32 %v1892_v15, %v1219_v58  ;;  %vm1228_vm11 = vweird.f32 %v1892_v15 }
 0xf43   :  { %1893 = vrsqrt.f32 %v1220_v62  ;;  %vm1229_vm6 = vmor %vm1227_vm12, %vm1228_vm11  ;;  %vm1237_vm8 = vweird.f32 %v1220_v62 }
 0xf44   :  { %v1223_v0 = vmul.f32 %v1892_v15, %v1222_v63 }
 0xf46   :  { %v1224_v2 = vmul.f32 0.5, %v1223_v0 }
 0xf48   :  { %v1225_v16 = vsub.f32 1.5, %v1224_v2  ;;  %v1791_v2 = vld [vmem:[%s2416_s3 + $0x20] sm:$0xff] }
 0xf49   :  { %v1894_v60 = vpop.eup %1893  ;;  %1427 = vmatpush.bf16.msrb.mxu1 %v1791_v2 }
 0xf4a   :  { %v1226_v3 = vmul.f32 %v1892_v15, %v1225_v16  ;;  %v1232_v4 = vmul.f32 %v1894_v60, %v1220_v62  ;;  %vm1238_vm7 = vweird.f32 %v1894_v60 }
 0xf4b   :  { %vm1239_vm9 = vmor %vm1237_vm8, %vm1238_vm7 }
 0xf4c   :  { %v1233_v7 = vmul.f32 %v1894_v60, %v1232_v4  ;;  %v1230_v8 = vsel %vm1229_vm6, %v1892_v15, %v1226_v3 }
 0xf4d   :  { %v1241_v14 = vmul.f32 %v1230_v8, %v1207_v42 }
 0xf4e   :  { %v1234_v9 = vmul.f32 0.5, %v1233_v7 }
 0xf4f   :  { %v1246_v19 = vmul.f32 %v1833_v12, %v1241_v14 }
 0xf50   :  { %v1235_v10 = vsub.f32 1.5, %v1234_v9 }
 0xf51   :  { %v2299_v52 = vadd.f32 %v1834_v18, %v1246_v19 }
 0xf52   :  { %v1236_v55 = vmul.f32 %v1894_v60, %v1235_v10 }
 0xf54   :  { %v1240_v17 = vsel %vm1239_vm9, %v1894_v60, %v1236_v55  ;;  %vm195_vm9 = vcmask 1041409  }
 0xf55   :  { %v1242_v21 = vmul.f32 %v1240_v17, %v1208_v47 }
 0xf57   :  { %v1247_v45 = vmul.f32 %v1833_v12, %v1242_v21 }
 0xf59   :  { %v2301_v23 = vadd.f32 %v1834_v18, %v1247_v45 }
 0xf5b   :  { %v1253_v24 = vpack.c.bf16 %v2301_v23, %v2299_v52 }
 0xf5d   :  { %1741 = vmatmul.msk.bf16.vlgmr.msra.gmra.mxu0 %vm85_vm3, %v1253_v24 }
 0xfda   :  { %v1286_v26 = vpop.f32.mrf.mxu0 }
 0xfdb   :  { %v2309_v27 = vadd.f32 %v1835_v25, %v1286_v26 }
 0xfdd   :  { %v2312_v22 = vmul.f32 0.70710677, %v2309_v27 }
 0xfdf   :  { %v1295_v28 = vmul.f32 %v2312_v22, %v2312_v22 }
 0xfe1   :  { %v1296_v29 = vmin.f32 %v1295_v28, 16.0 }
 0xfe2   :  { %v1288_v39 = vpop.f32.mrf.mxu0 }
 0xfe3   :  { %v1297_v30 = vmul.f32 2.1237322e-06, %v1296_v29  ;;  %v1308_v31 = vmul.f32 3.8918573e-05, %v1296_v29  ;;  %v2316_v1 = vadd.f32 %v1835_v25, %v1288_v39 }
 0xfe5   :  { %v1298_v41 = vadd.f32 0.00028619796, %v1297_v30  ;;  %v1309_v33 = vadd.f32 0.001143296, %v1308_v31  ;;  %v2319_v6 = vmul.f32 0.70710677, %v2316_v1 }
 0xfe6   :  { %v1292_v50 = vmul.f32 0.5, %v2316_v1 }
 0xfe7   :  { %v1310_v20 = vmul.f32 %v1309_v33, %v1296_v29  ;;  %v1335_v34 = vmul.f32 %v2319_v6, %v2319_v6  ;;  %v1299_v36 = vmul.f32 %v1298_v41, %v1296_v29 }
 0xfe9   :  { %v1311_v37 = vadd.f32 0.014752088, %v1310_v20  ;;  %v1336_v38 = vmin.f32 %v1335_v34, 16.0  ;;  %v1300_v44 = vadd.f32 0.0036580483, %v1299_v36 }
 0xfeb   :  { %v1312_v42 = vmul.f32 %v1311_v37, %v1296_v29  ;;  %v1337_v43 = vmul.f32 2.1237322e-06, %v1336_v38  ;;  %v1348_v5 = vmul.f32 3.8918573e-05, %v1336_v38  ;;  %v1301_v54 = vmul.f32 %v1300_v44, %v1296_v29 }
 0xfed   :  { %v1313_v47 = vadd.f32 0.112945676, %v1312_v42  ;;  %v1338_v40 = vadd.f32 0.00028619796, %v1337_v43  ;;  %v1349_v49 = vadd.f32 0.001143296, %v1348_v5 }
 0xfee   :  { %v1302_v15 = vadd.f32 0.05243302, %v1301_v54 }
 0xfef   :  { %v1314_v46 = vmul.f32 %v1313_v47, %v1296_v29  ;;  %v1339_v51 = vmul.f32 %v1338_v40, %v1336_v38  ;;  %v1350_v53 = vmul.f32 %v1349_v49, %v1336_v38 }
 0xff0   :  { %v1303_v60 = vmul.f32 %v1302_v15, %v1296_v29 }
 0xff1   :  { %v1315_v56 = vadd.f32 0.4994258, %v1314_v46  ;;  %v1340_v57 = vadd.f32 0.0036580483, %v1339_v51  ;;  %v1351_v58 = vadd.f32 0.014752088, %v1350_v53 }
 0xff2   :  { %v1304_v9 = vadd.f32 0.18741608, %v1303_v60  ;;  %v1291_v46 = vmul.f32 0.5, %v2309_v27 }
 0xff3   :  { %v1316_v48 = vmul.f32 %v1315_v56, %v1296_v29  ;;  %v1352_v61 = vmul.f32 %v1351_v58, %v1336_v38  ;;  %v1341_v63 = vmul.f32 %v1340_v57, %v1336_v38 }
 0xff4   :  { %v1305_v17 = vmul.f32 %v1304_v9, %v1296_v29 }
 0xff5   :  { %v1317_v62 = vadd.f32 1.0, %v1316_v48  ;;  %v1353_v0 = vadd.f32 0.112945676, %v1352_v61  ;;  %v1342_v3 = vadd.f32 0.05243302, %v1341_v63 }
 0xff6   :  { %v1306_v25 = vadd.f32 1.1283791, %v1305_v17 }
 0xff7   :  { %1895 = vrcp.f32 %v1317_v62  ;;  %v1354_v16 = vmul.f32 %v1353_v0, %v1336_v38  ;;  %v1343_v12 = vmul.f32 %v1342_v3, %v1336_v38  ;;  %v1329_v19 = vand.u32 2147483648, %v1317_v62 }
 0xff8   :  { %v1327_v45 = vand.u32 2147483647, %v1317_v62  ;;  %vm1323_vm13 = vweird.f32 %v1317_v62  ;;  %v1307_v33 = vmul.f32 %v1306_v25, %v2312_v22 }
 0xff9   :  { %v1355_v4 = vadd.f32 0.4994258, %v1354_v16  ;;  %v1344_v21 = vadd.f32 0.18741608, %v1343_v12  ;;  %v1330_v39 = vor.u32 1.1754944e-38, %v1329_v19  ;;  %v1493_v12 = vld [vmem:[%s2413_s1 + $0x68] sm:$0xff] }
 0xffa   :  { %vm1328_vm0 = vcmp.eq.f32.partialorder %v1327_v45, 8.507059e+37 }
 0xffb   :  { %v1356_v7 = vmul.f32 %v1355_v4, %v1336_v38  ;;  %v1345_v30 = vmul.f32 %v1344_v21, %v1336_v38 }
 0xffd   :  { %v1896_v8 = vpop.eup %1895  ;;  %v1357_v14 = vadd.f32 1.0, %v1356_v7  ;;  %v1346_v29 = vadd.f32 1.1283791, %v1345_v30 }
 0xffe   :  { %v1319_v10 = vmul.f32 %v1896_v8, %v1317_v62  ;;  %vm1324_vm10 = vweird.f32 %v1896_v8 }
 0xfff   :  { %1897 = vrcp.f32 %v1357_v14  ;;  %vm1325_vm15 = vmor %vm1323_vm13, %vm1324_vm10  ;;  %v1369_v34 = vand.u32 2147483648, %v1357_v14  ;;  %v1367_v42 = vand.u32 2147483647, %v1357_v14  ;;  %vm1363_vm2 = vweird.f32 %v1357_v14 }
0x1000   :  { %v1320_v55 = vsub.f32 1.0, %v1319_v10  ;;  %v1347_v44 = vmul.f32 %v1346_v29, %v2319_v6  ;;  %v1836_v6 = vld [vmem:[%s2414_s4 + $0xd] ss:$0 sm:$0xff]  ;;  %v1494_v10 = vld [vmem:[%s2413_s1 + $0x70] sm:$0xff]  ;;  %vm1554_vm10 = vcmask 25600  }
0x1001   :  { %v1370_v43 = vor.u32 1.1754944e-38, %v1369_v34  ;;  %vm1368_vm5 = vcmp.eq.f32.partialorder %v1367_v42, 8.507059e+37 }
0x1002   :  { %v1321_v18 = vmul.f32 %v1896_v8, %v1320_v55  ;;  %v1492_v55 = vld [vmem:[%s2413_s1 + $0x60] sm:$0xff] }
0x1004   :  { %v1322_v24 = vadd.f32 %v1896_v8, %v1321_v18 }
0x1005   :  { %v1898_v26 = vpop.eup %1897 }
0x1006   :  { %v1326_v28 = vsel %vm1325_vm15, %v1896_v8, %v1322_v24  ;;  %v1359_v31 = vmul.f32 %v1898_v26, %v1357_v14  ;;  %vm1364_vm1 = vweird.f32 %v1898_v26  ;;  %vm1580_vm15 = vcmask 17424  }
0x1007   :  { %v1331_v41 = vsel %vm1328_vm0, %v1330_v39, %v1326_v28  ;;  %vm1365_vm4 = vmor %vm1363_vm2, %vm1364_vm1 }
0x1008   :  { %v1360_v20 = vsub.f32 1.0, %v1359_v31  ;;  %v1332_v36 = vmul.f32 %v1331_v41, %v1307_v33  ;;  %v1837_v33 = vld [vmem:[%s2414_s4 + $0xe] ss:$0 sm:$0xff] }
0x100a   :  { %v1361_v37 = vmul.f32 %v1898_v26, %v1360_v20  ;;  %v1742_v5 = vclamps-f32 %v1332_v36, 1.0  ;;  %v1838_v36 = vld [vmem:[%s2414_s4 + $0xf] ss:$0 sm:$0xff] }
0x100c   :  { %v1362_v35 = vadd.f32 %v1898_v26, %v1361_v37  ;;  %v1375_v49 = vadd.f32 1.0, %v1742_v5 }
0x100e   :  { %v1366_v38 = vsel %vm1365_vm4, %v1898_v26, %v1362_v35  ;;  %v1377_v53 = vmul.f32 %v1375_v49, %v1291_v46  ;;  %v1527_v49 = vld [vmem:[%s2413_s1 + $0x98] sm:$0xff]  ;;  %v1525_v46 = vld [vmem:[%s2413_s1 + $0x88] sm:$0xff] }
0x100f   :  { %v1371_v47 = vsel %vm1368_vm5, %v1370_v43, %v1366_v38  ;;  %vm1616_vm5 = vcmask 0  }
0x1010   :  { %v1372_v40 = vmul.f32 %v1371_v47, %v1347_v44 }
0x1012   :  { %v1743_v22 = vclamps-f32 %v1372_v40, 1.0  ;;  %v1528_v40 = vld [vmem:[%s2413_s1 + $0xa0] sm:$0xff] }
0x1013   :  { %1546 = vmatpush.msrb.mxu3 %v1528_v40 }
0x1014   :  { %v1376_v51 = vadd.f32 1.0, %v1743_v22  ;;  %v1526_v22 = vld [vmem:[%s2413_s1 + $0x90] sm:$0xff] }
0x1015   :  { %1547 = vmatpush.msrb.mxu3 %v1527_v49 }
0x1016   :  { %v1378_v54 = vmul.f32 %v1376_v51, %v1292_v50  ;;  %v1839_v50 = vld [vmem:[%s2413_s1 + $0x80] ss:$0 sm:$0xff] }
0x1017   :  { %1548 = vmatpush.msrb.mxu3 %v1526_v22 }
0x1018   :  { %v1379_v56 = vpack.c.bf16 %v1378_v54, %v1377_v53 }
0x1019   :  { %1549 = vmatpush.msrb.mxu3 %v1525_v46 }
0x101a   :  { %1769 = vmatmul.msk.bf16.vlgmr.msrb.gmra.mxu1 %vm759_vm14, %v1379_v56  ;;  %v1920_v56 = vmov 2  }
0x101b   :  { %1819 = vset.pattern.permute.xlu0 %v1920_v56 }
0x1097   :  { %v1429_v57 = vpop.f32.mrf.mxu1 }
0x1098   :  { %v1430_v58 = vadd.f32 %v1836_v6, %v1429_v57 }
0x109a   :  { %v1434_v48 = vadd.f32 %v1430_v58, %v2299_v52 }
0x109c   :  { %v1438_v59 = vsel %vm85_vm3, %v1434_v48, 0.0 }
0x109d   :  { %1439 = vadd.xlane.f32.xlu0 %v1438_v59  ;;  %v25_v59 = vld [vmem:[%s2412_s0] sm:$0x3]  ;;  %s1921_s0 = smov 126  }
0x109e   :  { %vm1575_vm13 = vcmp.ne.s32.totalorder %v25_v59, 4294967196 }
0x109f   :  { %v1431_v27 = vpop.f32.mrf.mxu1 }
0x10a0   :  { %v1432_v61 = vadd.f32 %v1836_v6, %v1431_v27  ;;  %v1840_v6 = vld [vmem:[%s2413_s1 + $0xa8] ss:$0 sm:$0xff] }
0x10a2   :  { %v1435_v1 = vadd.f32 %v1432_v61, %v2301_v23  ;;  %v1495_v23 = vld [vmem:[%s2413_s1 + $0x78] sm:$0xff] }
0x10a3   :  { %1516 = vmatpush.msrb.mxu2 %v1495_v23 }
0x10a4   :  { %v1441_v15 = vsel %vm85_vm3, %v1435_v1, 0.0 }
0x10a5   :  { %1442 = vadd.xlane.f32.xlu2 %v1441_v15  ;;  %1517 = vmatpush.msrb.mxu2 %v1494_v10 }
0x10a7   :  { %1518 = vmatpush.msrb.mxu2 %v1493_v12 }
0x10a9   :  { %1519 = vmatpush.msrb.mxu2 %v1492_v55 }
0x1110   :  { %v1440_v62 = vpop.xlane.xlu0 %1439 }
0x1111   :  { %v1444_v2 = vmul.f32 %v1440_v62, %v1999_v32 }
0x1113   :  { %v1446_v3 = vsub.f32 %v1434_v48, %v1444_v2 }
0x1115   :  { %v1448_v4 = vmul.f32 %v1446_v3, %v1446_v3 }
0x1117   :  { %v1450_v7 = vsel %vm85_vm3, %v1448_v4, 0.0 }
0x1118   :  { %v1443_v63 = vpop.xlane.xlu2 %1442 }
0x1119   :  { %v1445_v0 = vmul.f32 %v1443_v63, %v1999_v32 }
0x111b   :  { %v1447_v16 = vsub.f32 %v1435_v1, %v1445_v0 }
0x111d   :  { %v1449_v60 = vmul.f32 %v1447_v16, %v1447_v16 }
0x111f   :  { %v1453_v52 = vsel %vm85_vm3, %v1449_v60, 0.0 }
0x1120   :  { %1454 = vadd.xlane.f32.xlu0 %v1453_v52 }
0x1128   :  { %1451 = vadd.xlane.f32.xlu0 %v1450_v7 }
0x1193   :  { %v1455_v8 = vpop.xlane.xlu0 %1454 }
0x1194   :  { %v1457_v9 = vmul.f32 %v1455_v8, %v1999_v32 }
0x1196   :  { %v1459_v14 = vadd.f32 1e-12, %v1457_v9 }
0x1198   :  { %1899 = vrsqrt.f32 %v1459_v14  ;;  %vm1476_vm11 = vweird.f32 %v1459_v14 }
0x119b   :  { %v1452_v17 = vpop.xlane.xlu0 %1451 }
0x119c   :  { %v1456_v18 = vmul.f32 %v1452_v17, %v1999_v32 }
0x119e   :  { %v1900_v19 = vpop.eup %1899  ;;  %v1458_v21 = vadd.f32 1e-12, %v1456_v18 }
0x119f   :  { %v1471_v45 = vmul.f32 %v1900_v19, %v1459_v14  ;;  %vm1477_vm14 = vweird.f32 %v1900_v19 }
0x11a0   :  { %1901 = vrsqrt.f32 %v1458_v21  ;;  %vm1478_vm12 = vmor %vm1476_vm11, %vm1477_vm14  ;;  %vm1466_vm7 = vweird.f32 %v1458_v21 }
0x11a1   :  { %v1472_v24 = vmul.f32 %v1900_v19, %v1471_v45 }
0x11a3   :  { %v1473_v25 = vmul.f32 0.5, %v1472_v24 }
0x11a5   :  { %v1474_v26 = vsub.f32 1.5, %v1473_v25 }
0x11a6   :  { %v1902_v28 = vpop.eup %1901 }
0x11a7   :  { %v1475_v39 = vmul.f32 %v1900_v19, %v1474_v26  ;;  %v1461_v30 = vmul.f32 %v1902_v28, %v1458_v21  ;;  %vm1467_vm6 = vweird.f32 %v1902_v28 }
0x11a8   :  { %vm1468_vm8 = vmor %vm1466_vm7, %vm1467_vm6 }
0x11a9   :  { %v1479_v31 = vsel %vm1478_vm12, %v1900_v19, %v1475_v39  ;;  %v1462_v41 = vmul.f32 %v1902_v28, %v1461_v30 }
0x11aa   :  { %v1481_v32 = vmul.f32 %v1479_v31, %v1447_v16  ;;  %v1774_v16 = vsel %vm1575_vm13, 1.0, %v1912_v13 }
0x11ab   :  { %v1463_v20 = vmul.f32 0.5, %v1462_v41  ;;  %v1588_v60 = vsel %vm1580_vm15, %v1774_v16, 0.0 }
0x11ac   :  { %v1486_v34 = vmul.f32 %v1837_v33, %v1481_v32 }
0x11ad   :  { %v1464_v29 = vsub.f32 1.5, %v1463_v20 }
0x11ae   :  { %v1491_v43 = vadd.f32 %v1838_v36, %v1486_v34 }
0x11af   :  { %v1465_v37 = vmul.f32 %v1902_v28, %v1464_v29 }
0x11b0   :  { %v1500_v38 = vrot.slane %v1491_v43, 7 }
0x11b1   :  { %v1469_v42 = vsel %vm1468_vm8, %v1902_v28, %v1465_v37 }
0x11b2   :  { %v1480_v35 = vmul.f32 %v1469_v42, %v1446_v3  ;;  %v1589_v3 = vrot.slane %v1588_v60, 4 }
0x11b4   :  { %v1485_v5 = vmul.f32 %v1837_v33, %v1480_v35  ;;  %v1590_v52 = vadd.f32 %v1589_v3, %v1588_v60 }
0x11b6   :  { %v1490_v44 = vadd.f32 %v1838_v36, %v1485_v5  ;;  %v1591_v4 = vrot.slane %v1590_v52, 2 }
0x11b8   :  { %v1501_v47 = vsel %vm195_vm9, %v1500_v38, %v1490_v44  ;;  %v1592_v7 = vadd.f32 %v1591_v4, %v1590_v52 }
0x11b9   :  { %1772 = vmatmul.msk.f32.vlgmr.msrb.gmra.mxu2 %vm85_vm3, %v1501_v47 }
0x11ba   :  { %v1593_v23 = vrot.slane %v1592_v7, 1 }
0x11bc   :  { %v1594_v8 = vadd.f32 %v1593_v23, %v1592_v7 }
0x11be   :  { %vm1600_vm0 = vweird.f32 %v1594_v8  ;;  %v1606_v25 = vand.u32 2147483648, %v1594_v8  ;;  %v1604_v39 = vand.u32 2147483647, %v1594_v8 }
0x11c0   :  { %v1607_v31 = vor.u32 1.1754944e-38, %v1606_v25  ;;  %vm1605_vm4 = vcmp.eq.f32.partialorder %v1604_v39, 8.507059e+37 }
0x123c   :  { %v1521_v51 = vpop.f32.mrf.mxu2 }
0x123d   :  { %v1522_v53 = vadd.f32 %v1839_v50, %v1521_v51 }
0x123f   :  { %1903 = vtanh.f32 %v1522_v53 }
0x1245   :  { %v1904_v54 = vpop.eup %1903 }
0x1246   :  { %1773 = vmatmul.msk.f32.vlgmr.msrb.gmra.mxu3 %vm85_vm3, %v1904_v54 }
0x12c9   :  { %v1551_v57 = vpop.f32.mrf.mxu3 }
0x12ca   :  { %v1552_v58 = vadd.f32 %v1840_v6, %v1551_v57 }
0x12cc   :  { %v1555_v48 = vsel %vm1554_vm10, %v1552_v58, -inf  ;;  %1611 = vst.msk [vmem:[%s2417_s5] sm:$0x3] %vm1554_vm10, %v1552_v58 }
0x12cd   :  { %1556 = vmax.xlane.f32.xlu0 %v1555_v48 }
0x12e1   :  { %1568 = vperm.xlu0 %1819, %v25_v59  }
0x1340   :  { %v1557_v27 = vpop.xlane.xlu0 %1556 }
0x1341   :  { %v1558_v61 = vsub.f32 %v1552_v58, %v1557_v27 }
0x1343   :  { %v1559_v1 = vmul.f32 1.442695, %v1558_v61 }
0x1345   :  { %1905 = vpow2.f32 %v1559_v1 }
0x1346   :  { %1907 = vrcp.f32 %v1594_v8 }
0x134b   :  { %v1906_v15 = vpop.eup %1905 }
0x134c   :  { %v1561_v62 = vsel %vm1554_vm10, %v1906_v15, 0.0 }
0x134d   :  { %1562 = vadd.xlane.f32.xlu1 %v1561_v62 }
0x1353   :  { %v1569_v63 = vpop.permute.xlu0 %1568 }
0x1354   :  { %vm1570_vm3 = vcmp.eq.s32.totalorder %v1985_v11, %v1569_v63  ;;  %v1908_v11 = vpop.eup %1907 }
0x1355   :  { %v1571_v0 = vsel %vm1570_vm3, %v1552_v58, 0.0  ;;  %v1596_v12 = vmul.f32 %v1908_v11, %v1594_v8  ;;  %vm1601_vm1 = vweird.f32 %v1908_v11 }
0x1356   :  { %v1572_v2 = vsel %vm1554_vm10, %v1571_v0, 0.0  ;;  %vm1602_vm2 = vmor %vm1600_vm0, %vm1601_vm1 }
0x1357   :  { %1573 = vadd.xlane.f32.xlu2 %v1572_v2  ;;  %v1597_v18 = vsub.f32 1.0, %v1596_v12 }
0x1359   :  { %v1598_v21 = vmul.f32 %v1908_v11, %v1597_v18 }
0x135b   :  { %v1599_v28 = vadd.f32 %v1908_v11, %v1598_v21 }
0x135d   :  { %v1603_v33 = vsel %vm1602_vm2, %v1908_v11, %v1599_v28 }
0x135e   :  { %v1608_v20 = vsel %vm1605_vm4, %v1607_v31, %v1603_v33 }
0x13c0   :  { %v1563_v9 = vpop.xlane.xlu1 %1562 }
0x13c1   :  { %1909 = vlog2.f32 %v1563_v9 }
0x13c7   :  { %v1910_v10 = vpop.eup %1909 }
0x13c8   :  { %v1565_v14 = vmul.f32 0.6931472, %v1910_v10 }
0x13ca   :  { %v1566_v55 = vadd.f32 %v1565_v14, %v1557_v27  ;;  %v1574_v17 = vpop.xlane.xlu2 %1573 }
0x13cc   :  { %v1578_v13 = vsub.f32 %v1566_v55, %v1574_v17 }
0x13ce   :  { %v1579_v19 = vmul.f32 %v1774_v16, %v1578_v13 }
0x13d0   :  { %v1581_v45 = vsel %vm1580_vm15, %v1579_v19, 0.0 }
0x13d1   :  { %v1582_v24 = vrot.slane %v1581_v45, 4 }
0x13d3   :  { %v1583_v26 = vadd.f32 %v1582_v24, %v1581_v45 }
0x13d5   :  { %v1584_v30 = vrot.slane %v1583_v26, 2 }
0x13d7   :  { %v1585_v41 = vadd.f32 %v1584_v30, %v1583_v26 }
0x13d9   :  { %v1586_v32 = vrot.slane %v1585_v41, 1 }
0x13db   :  { %v1587_v29 = vadd.f32 %v1586_v32, %v1585_v41 }
0x13dd   :  { %v1609_v34 = vmul.f32 %v1608_v20, %v1587_v29 }
0x13df   :  { %1613 = vrot.lane.b32.xlu1 %v1609_v34, %s1921_s0 }
0x1451   :  { %v1614_v36 = vpop.permute.xlu1 %1613 }
0x1452   :  { %1617 = vst.msk [vmem:[%s2417_s5 + $0x2] sm:$0x1] %vm1616_vm5, %v1614_v36 }

</bundles_post_ra>
